<compile_context>
chip_gen: v5e
topology: v5e:2x2
jax: 0.10.0
libtpu: 0.0.40
codegen_flags: <defaults>
</compile_context>

<pallas_src>
import functools

import jax
import jax.numpy as jnp
from jax import lax
from jax.experimental import pallas as pl
from jax.experimental.pallas import tpu as pltpu


GROUP = 8  # timesteps per unrolled group (static 8x unroll for LLO visibility)


def _round_up(x, m):
    return (x + m - 1) // m * m


# ----------------------------- Pallas kernel ---------------------------------
def coconut_kernel(x_ref, w_ih_ref, w_hh_ref, b_ref, wf_ref, bf_ref, wc_hbm_ref,
                   feat_ref, logit_ref,
                   xg_scratch, wc_vmem, wc_sem):
    Hp = w_hh_ref.shape[0]          # padded hidden size (multiple of 128)
    seq = x_ref.shape[0]

    # Kick off the classifier-weight HBM->VMEM DMA now; it is only needed after the
    # recurrence, so the copy is hidden under the serial time loop.
    wc_copy = pltpu.make_async_copy(wc_hbm_ref, wc_vmem, wc_sem)
    wc_copy.start()

    # Input projection for all timesteps at once on the MXU: (seq, 4*Hp).
    # (The 0.5 sigmoid pre-scale for the i/f/o gate columns is already baked into
    #  w_ih and b at pad time.)
    xg_scratch[...] = (
        jnp.dot(x_ref[...], w_ih_ref[...], preferred_element_type=jnp.float32)
        + b_ref[...]
    )

    def cell(xg_row, h, c):
        # bf16 MXU operands; keep the ref inside the dot (no value hoist / spills).
        gates = xg_row + jnp.dot(h.astype(jnp.bfloat16), w_hh_ref[...],
                                 preferred_element_type=jnp.float32)
        # Single EUP push over the full (1, 4*Hp) row.  i/f/o pre-activations were
        # pre-scaled by 0.5, so sigmoid(x) = 0.5*(tanh(x/2)+1) = 0.5*(t+1).
        t = jnp.tanh(gates)
        i_g = 0.5 * (t[:, 0 * Hp:1 * Hp] + 1.0)   # 128-lane aligned slices
        f_g = 0.5 * (t[:, 1 * Hp:2 * Hp] + 1.0)
        g_g = t[:, 2 * Hp:3 * Hp]
        o_g = 0.5 * (t[:, 3 * Hp:4 * Hp] + 1.0)
        c_new = f_g * c + i_g * g_g
        h_new = o_g * jnp.tanh(c_new)
        return h_new, c_new

    n_groups = seq // GROUP
    rem = seq - n_groups * GROUP

    h0 = jnp.zeros((1, Hp), jnp.float32)
    c0 = jnp.zeros((1, Hp), jnp.float32)

    def group_body(g, carry):
        h, c = carry
        t0 = pl.multiple_of(g * GROUP, GROUP)
        for r in range(GROUP):                         # static 8x unroll
            h, c = cell(xg_scratch[pl.ds(t0 + r, 1), :], h, c)   # per-row vld
        return (h, c)

    h, c = lax.fori_loop(0, n_groups, group_body, (h0, c0))

    for r in range(rem):                               # static remainder steps
        t = n_groups * GROUP + r
        h, c = cell(xg_scratch[pl.ds(t, 1), :], h, c)

    # features = Linear(lstm_size -> feature_size)  (rows/cols zero-padded), f32.
    feat = jnp.dot(h, wf_ref[...], preferred_element_type=jnp.float32) + bf_ref[...]
    feat_ref[...] = feat

    # Dropout is identity at inference (eval mode) -> classify (no bias).
    # TODO(synk): training-mode dropout mask (pltpu.prng_seed/prng_random_bits) not
    # implemented; eval semantics used.
    wc_copy.wait()
    logit_ref[...] = jnp.dot(feat.astype(jnp.bfloat16), wc_vmem[...],
                             preferred_element_type=jnp.float32)


# ------------------------------- wrapper --------------------------------------
def _pad_params(params):
    """Zero-pad dims to 128-lane multiples, bake the 0.5 sigmoid pre-scale into the
    i/f/o gate columns, and cast w_hh / w_cls to bf16 (MXU operands)."""
    In = params["w_ih"].shape[0]
    H = params["w_hh"].shape[0]
    F = params["w_feat"].shape[1]
    C = params["w_cls"].shape[1]
    In_p = _round_up(In, 128)
    Hp, Fp, Cp = _round_up(H, 128), _round_up(F, 128), _round_up(C, 128)

    def prep_gates(w):
        # (..., 4*H) -> (..., 4*Hp): pre-scale i/f/o blocks by 0.5 (single-tanh
        # sigmoid trick), keep g unscaled, zero-pad each gate block to Hp lanes.
        i_b, f_b, g_b, o_b = jnp.split(w, 4, axis=-1)
        pad = [(0, 0)] * (w.ndim - 1) + [(0, Hp - H)]
        return jnp.concatenate(
            [jnp.pad(0.5 * i_b, pad), jnp.pad(0.5 * f_b, pad),
             jnp.pad(g_b, pad), jnp.pad(0.5 * o_b, pad)], axis=-1)

    w_ih = jnp.pad(prep_gates(params["w_ih"]), ((0, In_p - In), (0, 0)))       # (In_p, 4Hp) f32
    w_hh = prep_gates(jnp.pad(params["w_hh"], ((0, Hp - H), (0, 0))))          # (Hp, 4Hp)
    padded = {
        "w_ih": w_ih,
        "w_hh": w_hh.astype(jnp.bfloat16),                                     # bf16 MXU operand
        "b": prep_gates(params["b"]),                                          # (1, 4Hp) f32
        "w_feat": jnp.pad(params["w_feat"], ((0, Hp - H), (0, Fp - F))),       # (Hp, Fp) f32
        "b_feat": jnp.pad(params["b_feat"], ((0, 0), (0, Fp - F))),            # (1, Fp) f32
        "w_cls": jnp.pad(params["w_cls"],
                         ((0, Fp - F), (0, Cp - C))).astype(jnp.bfloat16),     # (Fp, Cp) bf16
    }
    return padded, (In_p, Hp, Fp, Cp)


@jax.jit
def coconut_forward(x_seq, params):
    """x_seq: (seq, input_size) float32. Returns (features (1,F), logits (1,C))."""
    F = params["w_feat"].shape[1]
    C = params["w_cls"].shape[1]
    seq, In = x_seq.shape

    padded, (In_p, Hp, Fp, Cp) = _pad_params(params)
    x_p = jnp.pad(x_seq, ((0, 0), (0, In_p - In)))     # lane-dense input for xg GEMM

    # VMEM budget: inputs + outputs + scratch (computed, with headroom — not hardcoded).
    vmem_bytes = (
        x_p.size * 4 + padded["w_ih"].size * 4 + padded["w_hh"].size * 2
        + padded["b"].size * 4 + padded["w_feat"].size * 4 + padded["b_feat"].size * 4
        + (Fp + Cp) * 4                    # outputs
        + seq * 4 * Hp * 4                 # xg_scratch
        + Fp * Cp * 2                      # bf16 classifier landing buffer
    )
    vmem_limit = min(100 * 1024 * 1024, 2 * int(vmem_bytes) + (4 << 20))

    vmem = pl.BlockSpec(memory_space=pltpu.MemorySpace.VMEM)
    hbm = pl.BlockSpec(memory_space=pl.ANY)   # classifier weight: manual, hidden DMA

    feat_p, logits_p = pl.pallas_call(
        coconut_kernel,
        out_shape=(
            jax.ShapeDtypeStruct((1, Fp), jnp.float32),
            jax.ShapeDtypeStruct((1, Cp), jnp.float32),
        ),
        in_specs=[vmem, vmem, vmem, vmem, vmem, vmem, hbm],
        out_specs=(vmem, vmem),
        scratch_shapes=[
            pltpu.VMEM((seq, 4 * Hp), jnp.float32),    # x @ w_ih + b for all timesteps
            pltpu.VMEM((Fp, Cp), jnp.bfloat16),        # classifier weight landing buffer
            pltpu.SemaphoreType.DMA(()),
        ],
        compiler_params=pltpu.CompilerParams(vmem_limit_bytes=vmem_limit),
    )(x_p, padded["w_ih"], padded["w_hh"], padded["b"],
      padded["w_feat"], padded["b_feat"], padded["w_cls"])

    # Slice padded (lane-dense) outputs back to the true sizes.
    return feat_p[:, :F], logits_p[:, :C]


# ------------------------- pure-JAX reference ---------------------------------
def coconut_reference(x_seq, params):
    H = params["w_hh"].shape[0]
    hdot = functools.partial(jnp.dot, precision=jax.lax.Precision.HIGHEST)
    xg = hdot(x_seq, params["w_ih"]) + params["b"]
    h = jnp.zeros((1, H), jnp.float32)
    c = jnp.zeros((1, H), jnp.float32)
    for t in range(x_seq.shape[0]):
        gates = xg[t:t + 1] + hdot(h, params["w_hh"])
        i_g = jax.nn.sigmoid(gates[:, 0 * H:1 * H])
        f_g = jax.nn.sigmoid(gates[:, 1 * H:2 * H])
        g_g = jnp.tanh(gates[:, 2 * H:3 * H])
        o_g = jax.nn.sigmoid(gates[:, 3 * H:4 * H])
        c = f_g * c + i_g * g_g
        h = o_g * jnp.tanh(c)
    feat = hdot(h, params["w_feat"]) + params["b_feat"]
    logits = hdot(feat, params["w_cls"])
    return feat, logits


# ------------------------- deterministic params --------------------------------
def init_params(key, input_size, lstm_size, feature_size, num_classes):
    ks = jax.random.split(key, 7)
    u = lambda k, shape, a: jax.random.uniform(k, shape, jnp.float32, -a, a)
    H = lstm_size
    # PyTorch layouts, then transpose for x @ W.
    w_ih_pt = u(ks[0], (4 * H, input_size), 0.1)     # uniform_(-0.1, 0.1)
    w_hh_pt = u(ks[1], (4 * H, H), 0.1)
    bnd = 1.0 / jnp.sqrt(H)
    b_ih = u(ks[2], (4 * H,), bnd)                   # PyTorch default bias init
    b_hh = u(ks[3], (4 * H,), bnd)
    w_feat_pt = u(ks[4], (feature_size, H), 0.1)
    b_feat = u(ks[5], (feature_size,), 1.0 / jnp.sqrt(H))
    w_cls_pt = u(ks[6], (num_classes, feature_size), 0.1)
    return {
        "w_ih": w_ih_pt.T,                            # (input, 4H)
        "w_hh": w_hh_pt.T,                            # (H, 4H)
        "b": (b_ih + b_hh)[None, :],                  # (1, 4H)
        "w_feat": w_feat_pt.T,                        # (H, F)
        "b_feat": b_feat[None, :],                    # (1, F)
        "w_cls": w_cls_pt.T,                          # (F, C)
    }


if __name__ == "__main__":
    # Small shapes consistent with the module (scaled down from 768/64/192/9292).
    SEQ, INPUT_SIZE, LSTM_SIZE, FEATURE_SIZE, NUM_CLASSES = 8, 64, 32, 48, 256

    key = jax.random.PRNGKey(0)
    k_in, k_par = jax.random.split(key)

    # Mimic the PyTorch call: input_tensor[0] has shape (1, seq, input_size) and is
    # viewed to (seq, 1, input_size); we squeeze batch=1 -> (seq, input_size).
    input_tensor = jax.random.normal(k_in, (2, 1, SEQ, INPUT_SIZE), jnp.float32)
    x_seq = input_tensor[0].reshape(SEQ, INPUT_SIZE)

    params = init_params(k_par, INPUT_SIZE, LSTM_SIZE, FEATURE_SIZE, NUM_CLASSES)

    feat, logits = coconut_forward(x_seq, params)
    jax.block_until_ready((feat, logits))

    feat_ref, logits_ref = coconut_reference(x_seq, params)
    assert feat.shape == (1, FEATURE_SIZE) and logits.shape == (1, NUM_CLASSES)
    # Tolerances reflect bf16 MXU operands (w_hh / h and w_cls / feat) vs f32 reference.
    assert jnp.allclose(feat, feat_ref, rtol=2e-2, atol=2e-3), (
        "feat max|diff|=%e" % float(jnp.max(jnp.abs(feat - feat_ref))))
    assert jnp.allclose(logits, logits_ref, rtol=2e-2, atol=2e-3), (
        "logits max|diff|=%e" % float(jnp.max(jnp.abs(logits - logits_ref))))

    print("KERNEL_OK")
</pallas_src>

<mosaic_0001>
module attributes {stable_mosaic.version = 11 : i64} {
  func.func @coconut_kernel(%arg0: memref<8x128xf32, #tpu.memory_space<vmem>>, %arg1: memref<128x512xf32, #tpu.memory_space<vmem>>, %arg2: memref<128x512xbf16, #tpu.memory_space<vmem>>, %arg3: memref<1x512xf32, #tpu.memory_space<vmem>>, %arg4: memref<128x128xf32, #tpu.memory_space<vmem>>, %arg5: memref<1x128xf32, #tpu.memory_space<vmem>>, %arg6: memref<128x256xbf16, #tpu.memory_space<any>>, %arg7: memref<1x128xf32, #tpu.memory_space<vmem>>, %arg8: memref<1x256xf32, #tpu.memory_space<vmem>>, %arg9: memref<8x512xf32, #tpu.memory_space<vmem>>, %arg10: memref<128x256xbf16, #tpu.memory_space<vmem>>, %arg11: memref<!tpu.dma_semaphore, #tpu.memory_space<semaphore_mem>>) attributes {dimension_semantics = [], scalar_prefetch = 0 : i64, scratch_operands = 3 : i64, tpu.core_type = #tpu.core_type<tc>} {
    tpu.enqueue_dma source(%arg6 : memref<128x256xbf16, #tpu.memory_space<any>>) target(%arg10 : memref<128x256xbf16, #tpu.memory_space<vmem>>) target_semaphore(%arg11 : memref<!tpu.dma_semaphore, #tpu.memory_space<semaphore_mem>>)
    %c0 = arith.constant 0 : index
    %c0_0 = arith.constant 0 : index
    %0 = vector.load %arg0[%c0, %c0_0] : memref<8x128xf32, #tpu.memory_space<vmem>>, vector<8x128xf32>
    %c0_1 = arith.constant 0 : index
    %c0_2 = arith.constant 0 : index
    %1 = vector.load %arg1[%c0_1, %c0_2] : memref<128x512xf32, #tpu.memory_space<vmem>>, vector<128x512xf32>
    %cst = arith.constant dense<0.000000e+00> : vector<8x512xf32>
    %2 = tpu.matmul %0, %1, %cst {dimension_numbers = #tpu.dot_dimension_numbers<[1], [0], [0], [1], [0, 0, 1, 1], [], []>} : vector<8x128xf32>, vector<128x512xf32>, vector<8x512xf32> -> vector<8x512xf32>
    %c0_3 = arith.constant 0 : index
    %c0_4 = arith.constant 0 : index
    %3 = vector.load %arg3[%c0_3, %c0_4] : memref<1x512xf32, #tpu.memory_space<vmem>>, vector<1x512xf32>
    %4 = vector.broadcast %3 : vector<1x512xf32> to vector<8x512xf32>
    %5 = arith.addf %2, %4 : vector<8x512xf32>
    %c0_5 = arith.constant 0 : index
    %c0_6 = arith.constant 0 : index
    %6 = vector.load %arg9[%c0_5, %c0_6] : memref<8x512xf32, #tpu.memory_space<vmem>>, vector<8x512xf32>
    tpu.vector_store %arg9[%c0_5, %c0_6], %5 {strides = array<i32>} : memref<8x512xf32, #tpu.memory_space<vmem>>, vector<8x512xf32>,
    %cst_7 = arith.constant 0.000000e+00 : f32
    %7 = vector.broadcast %cst_7 : f32 to vector<1x128xf32>
    %cst_8 = arith.constant 0.000000e+00 : f32
    %8 = vector.broadcast %cst_8 : f32 to vector<1x128xf32>
    %c0_i32 = arith.constant 0 : i32
    %c8_i32 = arith.constant 8 : i32
    %9 = arith.muli %c0_i32, %c8_i32 : i32
    %10 = tpu.assume_multiple %9, 8 : i32
    %c0_i32_9 = arith.constant 0 : i32
    %11 = arith.addi %10, %c0_i32_9 : i32
    %12 = arith.index_cast %11 : i32 to index
    %c0_10 = arith.constant 0 : index
    %13 = vector.load %arg9[%12, %c0_10] : memref<8x512xf32, #tpu.memory_space<vmem>>, vector<1x512xf32>
    %14 = arith.truncf %7 : vector<1x128xf32> to vector<1x128xbf16>
    %c0_11 = arith.constant 0 : index
    %c0_12 = arith.constant 0 : index
    %15 = vector.load %arg2[%c0_11, %c0_12] : memref<128x512xbf16, #tpu.memory_space<vmem>>, vector<128x512xbf16>
    %cst_13 = arith.constant dense<0.000000e+00> : vector<1x512xf32>
    %16 = tpu.matmul %14, %15, %cst_13 {dimension_numbers = #tpu.dot_dimension_numbers<[1], [0], [0], [1], [0, 0, 1, 1], [], []>} : vector<1x128xbf16>, vector<128x512xbf16>, vector<1x512xf32> -> vector<1x512xf32>
    %17 = arith.addf %13, %16 : vector<1x512xf32>
    %18 = math.tanh %17 : vector<1x512xf32>
    %19 = vector.extract_strided_slice %18 {offsets = [0, 0], sizes = [1, 128], strides = [1, 1]} : vector<1x512xf32> to vector<1x128xf32>
    %cst_14 = arith.constant 1.000000e+00 : f32
    %20 = vector.broadcast %cst_14 : f32 to vector<1x128xf32>
    %21 = arith.addf %19, %20 : vector<1x128xf32>
    %cst_15 = arith.constant 5.000000e-01 : f32
    %22 = vector.broadcast %cst_15 : f32 to vector<1x128xf32>
    %23 = arith.mulf %22, %21 : vector<1x128xf32>
    %24 = vector.extract_strided_slice %18 {offsets = [0, 128], sizes = [1, 128], strides = [1, 1]} : vector<1x512xf32> to vector<1x128xf32>
    %cst_16 = arith.constant 1.000000e+00 : f32
    %25 = vector.broadcast %cst_16 : f32 to vector<1x128xf32>
    %26 = arith.addf %24, %25 : vector<1x128xf32>
    %cst_17 = arith.constant 5.000000e-01 : f32
    %27 = vector.broadcast %cst_17 : f32 to vector<1x128xf32>
    %28 = arith.mulf %27, %26 : vector<1x128xf32>
    %29 = vector.extract_strided_slice %18 {offsets = [0, 256], sizes = [1, 128], strides = [1, 1]} : vector<1x512xf32> to vector<1x128xf32>
    %30 = vector.extract_strided_slice %18 {offsets = [0, 384], sizes = [1, 128], strides = [1, 1]} : vector<1x512xf32> to vector<1x128xf32>
    %cst_18 = arith.constant 1.000000e+00 : f32
    %31 = vector.broadcast %cst_18 : f32 to vector<1x128xf32>
    %32 = arith.addf %30, %31 : vector<1x128xf32>
    %cst_19 = arith.constant 5.000000e-01 : f32
    %33 = vector.broadcast %cst_19 : f32 to vector<1x128xf32>
    %34 = arith.mulf %33, %32 : vector<1x128xf32>
    %35 = arith.mulf %28, %8 : vector<1x128xf32>
    %36 = arith.mulf %23, %29 : vector<1x128xf32>
    %37 = arith.addf %35, %36 : vector<1x128xf32>
    %38 = math.tanh %37 : vector<1x128xf32>
    %39 = arith.mulf %34, %38 : vector<1x128xf32>
    %c1_i32 = arith.constant 1 : i32
    %40 = arith.addi %10, %c1_i32 : i32
    %41 = arith.index_cast %40 : i32 to index
    %c0_20 = arith.constant 0 : index
    %42 = vector.load %arg9[%41, %c0_20] : memref<8x512xf32, #tpu.memory_space<vmem>>, vector<1x512xf32>
    %43 = arith.truncf %39 : vector<1x128xf32> to vector<1x128xbf16>
    %c0_21 = arith.constant 0 : index
    %c0_22 = arith.constant 0 : index
    %44 = vector.load %arg2[%c0_21, %c0_22] : memref<128x512xbf16, #tpu.memory_space<vmem>>, vector<128x512xbf16>
    %cst_23 = arith.constant dense<0.000000e+00> : vector<1x512xf32>
    %45 = tpu.matmul %43, %44, %cst_23 {dimension_numbers = #tpu.dot_dimension_numbers<[1], [0], [0], [1], [0, 0, 1, 1], [], []>} : vector<1x128xbf16>, vector<128x512xbf16>, vector<1x512xf32> -> vector<1x512xf32>
    %46 = arith.addf %42, %45 : vector<1x512xf32>
    %47 = math.tanh %46 : vector<1x512xf32>
    %48 = vector.extract_strided_slice %47 {offsets = [0, 0], sizes = [1, 128], strides = [1, 1]} : vector<1x512xf32> to vector<1x128xf32>
    %cst_24 = arith.constant 1.000000e+00 : f32
    %49 = vector.broadcast %cst_24 : f32 to vector<1x128xf32>
    %50 = arith.addf %48, %49 : vector<1x128xf32>
    %cst_25 = arith.constant 5.000000e-01 : f32
    %51 = vector.broadcast %cst_25 : f32 to vector<1x128xf32>
    %52 = arith.mulf %51, %50 : vector<1x128xf32>
    %53 = vector.extract_strided_slice %47 {offsets = [0, 128], sizes = [1, 128], strides = [1, 1]} : vector<1x512xf32> to vector<1x128xf32>
    %cst_26 = arith.constant 1.000000e+00 : f32
    %54 = vector.broadcast %cst_26 : f32 to vector<1x128xf32>
    %55 = arith.addf %53, %54 : vector<1x128xf32>
    %cst_27 = arith.constant 5.000000e-01 : f32
    %56 = vector.broadcast %cst_27 : f32 to vector<1x128xf32>
    %57 = arith.mulf %56, %55 : vector<1x128xf32>
    %58 = vector.extract_strided_slice %47 {offsets = [0, 256], sizes = [1, 128], strides = [1, 1]} : vector<1x512xf32> to vector<1x128xf32>
    %59 = vector.extract_strided_slice %47 {offsets = [0, 384], sizes = [1, 128], strides = [1, 1]} : vector<1x512xf32> to vector<1x128xf32>
    %cst_28 = arith.constant 1.000000e+00 : f32
    %60 = vector.broadcast %cst_28 : f32 to vector<1x128xf32>
    %61 = arith.addf %59, %60 : vector<1x128xf32>
    %cst_29 = arith.constant 5.000000e-01 : f32
    %62 = vector.broadcast %cst_29 : f32 to vector<1x128xf32>
    %63 = arith.mulf %62, %61 : vector<1x128xf32>
    %64 = arith.mulf %57, %37 : vector<1x128xf32>
    %65 = arith.mulf %52, %58 : vector<1x128xf32>
    %66 = arith.addf %64, %65 : vector<1x128xf32>
    %67 = math.tanh %66 : vector<1x128xf32>
    %68 = arith.mulf %63, %67 : vector<1x128xf32>
    %c2_i32 = arith.constant 2 : i32
    %69 = arith.addi %10, %c2_i32 : i32
    %70 = arith.index_cast %69 : i32 to index
    %c0_30 = arith.constant 0 : index
    %71 = vector.load %arg9[%70, %c0_30] : memref<8x512xf32, #tpu.memory_space<vmem>>, vector<1x512xf32>
    %72 = arith.truncf %68 : vector<1x128xf32> to vector<1x128xbf16>
    %c0_31 = arith.constant 0 : index
    %c0_32 = arith.constant 0 : index
    %73 = vector.load %arg2[%c0_31, %c0_32] : memref<128x512xbf16, #tpu.memory_space<vmem>>, vector<128x512xbf16>
    %cst_33 = arith.constant dense<0.000000e+00> : vector<1x512xf32>
    %74 = tpu.matmul %72, %73, %cst_33 {dimension_numbers = #tpu.dot_dimension_numbers<[1], [0], [0], [1], [0, 0, 1, 1], [], []>} : vector<1x128xbf16>, vector<128x512xbf16>, vector<1x512xf32> -> vector<1x512xf32>
    %75 = arith.addf %71, %74 : vector<1x512xf32>
    %76 = math.tanh %75 : vector<1x512xf32>
    %77 = vector.extract_strided_slice %76 {offsets = [0, 0], sizes = [1, 128], strides = [1, 1]} : vector<1x512xf32> to vector<1x128xf32>
    %cst_34 = arith.constant 1.000000e+00 : f32
    %78 = vector.broadcast %cst_34 : f32 to vector<1x128xf32>
    %79 = arith.addf %77, %78 : vector<1x128xf32>
    %cst_35 = arith.constant 5.000000e-01 : f32
    %80 = vector.broadcast %cst_35 : f32 to vector<1x128xf32>
    %81 = arith.mulf %80, %79 : vector<1x128xf32>
    %82 = vector.extract_strided_slice %76 {offsets = [0, 128], sizes = [1, 128], strides = [1, 1]} : vector<1x512xf32> to vector<1x128xf32>
    %cst_36 = arith.constant 1.000000e+00 : f32
    %83 = vector.broadcast %cst_36 : f32 to vector<1x128xf32>
    %84 = arith.addf %82, %83 : vector<1x128xf32>
    %cst_37 = arith.constant 5.000000e-01 : f32
    %85 = vector.broadcast %cst_37 : f32 to vector<1x128xf32>
    %86 = arith.mulf %85, %84 : vector<1x128xf32>
    %87 = vector.extract_strided_slice %76 {offsets = [0, 256], sizes = [1, 128], strides = [1, 1]} : vector<1x512xf32> to vector<1x128xf32>
    %88 = vector.extract_strided_slice %76 {offsets = [0, 384], sizes = [1, 128], strides = [1, 1]} : vector<1x512xf32> to vector<1x128xf32>
    %cst_38 = arith.constant 1.000000e+00 : f32
    %89 = vector.broadcast %cst_38 : f32 to vector<1x128xf32>
    %90 = arith.addf %88, %89 : vector<1x128xf32>
    %cst_39 = arith.constant 5.000000e-01 : f32
    %91 = vector.broadcast %cst_39 : f32 to vector<1x128xf32>
    %92 = arith.mulf %91, %90 : vector<1x128xf32>
    %93 = arith.mulf %86, %66 : vector<1x128xf32>
    %94 = arith.mulf %81, %87 : vector<1x128xf32>
    %95 = arith.addf %93, %94 : vector<1x128xf32>
    %96 = math.tanh %95 : vector<1x128xf32>
    %97 = arith.mulf %92, %96 : vector<1x128xf32>
    %c3_i32 = arith.constant 3 : i32
    %98 = arith.addi %10, %c3_i32 : i32
    %99 = arith.index_cast %98 : i32 to index
    %c0_40 = arith.constant 0 : index
    %100 = vector.load %arg9[%99, %c0_40] : memref<8x512xf32, #tpu.memory_space<vmem>>, vector<1x512xf32>
    %101 = arith.truncf %97 : vector<1x128xf32> to vector<1x128xbf16>
    %c0_41 = arith.constant 0 : index
    %c0_42 = arith.constant 0 : index
    %102 = vector.load %arg2[%c0_41, %c0_42] : memref<128x512xbf16, #tpu.memory_space<vmem>>, vector<128x512xbf16>
    %cst_43 = arith.constant dense<0.000000e+00> : vector<1x512xf32>
    %103 = tpu.matmul %101, %102, %cst_43 {dimension_numbers = #tpu.dot_dimension_numbers<[1], [0], [0], [1], [0, 0, 1, 1], [], []>} : vector<1x128xbf16>, vector<128x512xbf16>, vector<1x512xf32> -> vector<1x512xf32>
    %104 = arith.addf %100, %103 : vector<1x512xf32>
    %105 = math.tanh %104 : vector<1x512xf32>
    %106 = vector.extract_strided_slice %105 {offsets = [0, 0], sizes = [1, 128], strides = [1, 1]} : vector<1x512xf32> to vector<1x128xf32>
    %cst_44 = arith.constant 1.000000e+00 : f32
    %107 = vector.broadcast %cst_44 : f32 to vector<1x128xf32>
    %108 = arith.addf %106, %107 : vector<1x128xf32>
    %cst_45 = arith.constant 5.000000e-01 : f32
    %109 = vector.broadcast %cst_45 : f32 to vector<1x128xf32>
    %110 = arith.mulf %109, %108 : vector<1x128xf32>
    %111 = vector.extract_strided_slice %105 {offsets = [0, 128], sizes = [1, 128], strides = [1, 1]} : vector<1x512xf32> to vector<1x128xf32>
    %cst_46 = arith.constant 1.000000e+00 : f32
    %112 = vector.broadcast %cst_46 : f32 to vector<1x128xf32>
    %113 = arith.addf %111, %112 : vector<1x128xf32>
    %cst_47 = arith.constant 5.000000e-01 : f32
    %114 = vector.broadcast %cst_47 : f32 to vector<1x128xf32>
    %115 = arith.mulf %114, %113 : vector<1x128xf32>
    %116 = vector.extract_strided_slice %105 {offsets = [0, 256], sizes = [1, 128], strides = [1, 1]} : vector<1x512xf32> to vector<1x128xf32>
    %117 = vector.extract_strided_slice %105 {offsets = [0, 384], sizes = [1, 128], strides = [1, 1]} : vector<1x512xf32> to vector<1x128xf32>
    %cst_48 = arith.constant 1.000000e+00 : f32
    %118 = vector.broadcast %cst_48 : f32 to vector<1x128xf32>
    %119 = arith.addf %117, %118 : vector<1x128xf32>
    %cst_49 = arith.constant 5.000000e-01 : f32
    %120 = vector.broadcast %cst_49 : f32 to vector<1x128xf32>
    %121 = arith.mulf %120, %119 : vector<1x128xf32>
    %122 = arith.mulf %115, %95 : vector<1x128xf32>
    %123 = arith.mulf %110, %116 : vector<1x128xf32>
    %124 = arith.addf %122, %123 : vector<1x128xf32>
    %125 = math.tanh %124 : vector<1x128xf32>
    %126 = arith.mulf %121, %125 : vector<1x128xf32>
    %c4_i32 = arith.constant 4 : i32
    %127 = arith.addi %10, %c4_i32 : i32
    %128 = arith.index_cast %127 : i32 to index
    %c0_50 = arith.constant 0 : index
    %129 = vector.load %arg9[%128, %c0_50] : memref<8x512xf32, #tpu.memory_space<vmem>>, vector<1x512xf32>
    %130 = arith.truncf %126 : vector<1x128xf32> to vector<1x128xbf16>
    %c0_51 = arith.constant 0 : index
    %c0_52 = arith.constant 0 : index
    %131 = vector.load %arg2[%c0_51, %c0_52] : memref<128x512xbf16, #tpu.memory_space<vmem>>, vector<128x512xbf16>
    %cst_53 = arith.constant dense<0.000000e+00> : vector<1x512xf32>
    %132 = tpu.matmul %130, %131, %cst_53 {dimension_numbers = #tpu.dot_dimension_numbers<[1], [0], [0], [1], [0, 0, 1, 1], [], []>} : vector<1x128xbf16>, vector<128x512xbf16>, vector<1x512xf32> -> vector<1x512xf32>
    %133 = arith.addf %129, %132 : vector<1x512xf32>
    %134 = math.tanh %133 : vector<1x512xf32>
    %135 = vector.extract_strided_slice %134 {offsets = [0, 0], sizes = [1, 128], strides = [1, 1]} : vector<1x512xf32> to vector<1x128xf32>
    %cst_54 = arith.constant 1.000000e+00 : f32
    %136 = vector.broadcast %cst_54 : f32 to vector<1x128xf32>
    %137 = arith.addf %135, %136 : vector<1x128xf32>
    %cst_55 = arith.constant 5.000000e-01 : f32
    %138 = vector.broadcast %cst_55 : f32 to vector<1x128xf32>
    %139 = arith.mulf %138, %137 : vector<1x128xf32>
    %140 = vector.extract_strided_slice %134 {offsets = [0, 128], sizes = [1, 128], strides = [1, 1]} : vector<1x512xf32> to vector<1x128xf32>
    %cst_56 = arith.constant 1.000000e+00 : f32
    %141 = vector.broadcast %cst_56 : f32 to vector<1x128xf32>
    %142 = arith.addf %140, %141 : vector<1x128xf32>
    %cst_57 = arith.constant 5.000000e-01 : f32
    %143 = vector.broadcast %cst_57 : f32 to vector<1x128xf32>
    %144 = arith.mulf %143, %142 : vector<1x128xf32>
    %145 = vector.extract_strided_slice %134 {offsets = [0, 256], sizes = [1, 128], strides = [1, 1]} : vector<1x512xf32> to vector<1x128xf32>
    %146 = vector.extract_strided_slice %134 {offsets = [0, 384], sizes = [1, 128], strides = [1, 1]} : vector<1x512xf32> to vector<1x128xf32>
    %cst_58 = arith.constant 1.000000e+00 : f32
    %147 = vector.broadcast %cst_58 : f32 to vector<1x128xf32>
    %148 = arith.addf %146, %147 : vector<1x128xf32>
    %cst_59 = arith.constant 5.000000e-01 : f32
    %149 = vector.broadcast %cst_59 : f32 to vector<1x128xf32>
    %150 = arith.mulf %149, %148 : vector<1x128xf32>
    %151 = arith.mulf %144, %124 : vector<1x128xf32>
    %152 = arith.mulf %139, %145 : vector<1x128xf32>
    %153 = arith.addf %151, %152 : vector<1x128xf32>
    %154 = math.tanh %153 : vector<1x128xf32>
    %155 = arith.mulf %150, %154 : vector<1x128xf32>
    %c5_i32 = arith.constant 5 : i32
    %156 = arith.addi %10, %c5_i32 : i32
    %157 = arith.index_cast %156 : i32 to index
    %c0_60 = arith.constant 0 : index
    %158 = vector.load %arg9[%157, %c0_60] : memref<8x512xf32, #tpu.memory_space<vmem>>, vector<1x512xf32>
    %159 = arith.truncf %155 : vector<1x128xf32> to vector<1x128xbf16>
    %c0_61 = arith.constant 0 : index
    %c0_62 = arith.constant 0 : index
    %160 = vector.load %arg2[%c0_61, %c0_62] : memref<128x512xbf16, #tpu.memory_space<vmem>>, vector<128x512xbf16>
    %cst_63 = arith.constant dense<0.000000e+00> : vector<1x512xf32>
    %161 = tpu.matmul %159, %160, %cst_63 {dimension_numbers = #tpu.dot_dimension_numbers<[1], [0], [0], [1], [0, 0, 1, 1], [], []>} : vector<1x128xbf16>, vector<128x512xbf16>, vector<1x512xf32> -> vector<1x512xf32>
    %162 = arith.addf %158, %161 : vector<1x512xf32>
    %163 = math.tanh %162 : vector<1x512xf32>
    %164 = vector.extract_strided_slice %163 {offsets = [0, 0], sizes = [1, 128], strides = [1, 1]} : vector<1x512xf32> to vector<1x128xf32>
    %cst_64 = arith.constant 1.000000e+00 : f32
    %165 = vector.broadcast %cst_64 : f32 to vector<1x128xf32>
    %166 = arith.addf %164, %165 : vector<1x128xf32>
    %cst_65 = arith.constant 5.000000e-01 : f32
    %167 = vector.broadcast %cst_65 : f32 to vector<1x128xf32>
    %168 = arith.mulf %167, %166 : vector<1x128xf32>
    %169 = vector.extract_strided_slice %163 {offsets = [0, 128], sizes = [1, 128], strides = [1, 1]} : vector<1x512xf32> to vector<1x128xf32>
    %cst_66 = arith.constant 1.000000e+00 : f32
    %170 = vector.broadcast %cst_66 : f32 to vector<1x128xf32>
    %171 = arith.addf %169, %170 : vector<1x128xf32>
    %cst_67 = arith.constant 5.000000e-01 : f32
    %172 = vector.broadcast %cst_67 : f32 to vector<1x128xf32>
    %173 = arith.mulf %172, %171 : vector<1x128xf32>
    %174 = vector.extract_strided_slice %163 {offsets = [0, 256], sizes = [1, 128], strides = [1, 1]} : vector<1x512xf32> to vector<1x128xf32>
    %175 = vector.extract_strided_slice %163 {offsets = [0, 384], sizes = [1, 128], strides = [1, 1]} : vector<1x512xf32> to vector<1x128xf32>
    %cst_68 = arith.constant 1.000000e+00 : f32
    %176 = vector.broadcast %cst_68 : f32 to vector<1x128xf32>
    %177 = arith.addf %175, %176 : vector<1x128xf32>
    %cst_69 = arith.constant 5.000000e-01 : f32
    %178 = vector.broadcast %cst_69 : f32 to vector<1x128xf32>
    %179 = arith.mulf %178, %177 : vector<1x128xf32>
    %180 = arith.mulf %173, %153 : vector<1x128xf32>
    %181 = arith.mulf %168, %174 : vector<1x128xf32>
    %182 = arith.addf %180, %181 : vector<1x128xf32>
    %183 = math.tanh %182 : vector<1x128xf32>
    %184 = arith.mulf %179, %183 : vector<1x128xf32>
    %c6_i32 = arith.constant 6 : i32
    %185 = arith.addi %10, %c6_i32 : i32
    %186 = arith.index_cast %185 : i32 to index
    %c0_70 = arith.constant 0 : index
    %187 = vector.load %arg9[%186, %c0_70] : memref<8x512xf32, #tpu.memory_space<vmem>>, vector<1x512xf32>
    %188 = arith.truncf %184 : vector<1x128xf32> to vector<1x128xbf16>
    %c0_71 = arith.constant 0 : index
    %c0_72 = arith.constant 0 : index
    %189 = vector.load %arg2[%c0_71, %c0_72] : memref<128x512xbf16, #tpu.memory_space<vmem>>, vector<128x512xbf16>
    %cst_73 = arith.constant dense<0.000000e+00> : vector<1x512xf32>
    %190 = tpu.matmul %188, %189, %cst_73 {dimension_numbers = #tpu.dot_dimension_numbers<[1], [0], [0], [1], [0, 0, 1, 1], [], []>} : vector<1x128xbf16>, vector<128x512xbf16>, vector<1x512xf32> -> vector<1x512xf32>
    %191 = arith.addf %187, %190 : vector<1x512xf32>
    %192 = math.tanh %191 : vector<1x512xf32>
    %193 = vector.extract_strided_slice %192 {offsets = [0, 0], sizes = [1, 128], strides = [1, 1]} : vector<1x512xf32> to vector<1x128xf32>
    %cst_74 = arith.constant 1.000000e+00 : f32
    %194 = vector.broadcast %cst_74 : f32 to vector<1x128xf32>
    %195 = arith.addf %193, %194 : vector<1x128xf32>
    %cst_75 = arith.constant 5.000000e-01 : f32
    %196 = vector.broadcast %cst_75 : f32 to vector<1x128xf32>
    %197 = arith.mulf %196, %195 : vector<1x128xf32>
    %198 = vector.extract_strided_slice %192 {offsets = [0, 128], sizes = [1, 128], strides = [1, 1]} : vector<1x512xf32> to vector<1x128xf32>
    %cst_76 = arith.constant 1.000000e+00 : f32
    %199 = vector.broadcast %cst_76 : f32 to vector<1x128xf32>
    %200 = arith.addf %198, %199 : vector<1x128xf32>
    %cst_77 = arith.constant 5.000000e-01 : f32
    %201 = vector.broadcast %cst_77 : f32 to vector<1x128xf32>
    %202 = arith.mulf %201, %200 : vector<1x128xf32>
    %203 = vector.extract_strided_slice %192 {offsets = [0, 256], sizes = [1, 128], strides = [1, 1]} : vector<1x512xf32> to vector<1x128xf32>
    %204 = vector.extract_strided_slice %192 {offsets = [0, 384], sizes = [1, 128], strides = [1, 1]} : vector<1x512xf32> to vector<1x128xf32>
    %cst_78 = arith.constant 1.000000e+00 : f32
    %205 = vector.broadcast %cst_78 : f32 to vector<1x128xf32>
    %206 = arith.addf %204, %205 : vector<1x128xf32>
    %cst_79 = arith.constant 5.000000e-01 : f32
    %207 = vector.broadcast %cst_79 : f32 to vector<1x128xf32>
    %208 = arith.mulf %207, %206 : vector<1x128xf32>
    %209 = arith.mulf %202, %182 : vector<1x128xf32>
    %210 = arith.mulf %197, %203 : vector<1x128xf32>
    %211 = arith.addf %209, %210 : vector<1x128xf32>
    %212 = math.tanh %211 : vector<1x128xf32>
    %213 = arith.mulf %208, %212 : vector<1x128xf32>
    %c7_i32 = arith.constant 7 : i32
    %214 = arith.addi %10, %c7_i32 : i32
    %215 = arith.index_cast %214 : i32 to index
    %c0_80 = arith.constant 0 : index
    %216 = vector.load %arg9[%215, %c0_80] : memref<8x512xf32, #tpu.memory_space<vmem>>, vector<1x512xf32>
    %217 = arith.truncf %213 : vector<1x128xf32> to vector<1x128xbf16>
    %c0_81 = arith.constant 0 : index
    %c0_82 = arith.constant 0 : index
    %218 = vector.load %arg2[%c0_81, %c0_82] : memref<128x512xbf16, #tpu.memory_space<vmem>>, vector<128x512xbf16>
    %cst_83 = arith.constant dense<0.000000e+00> : vector<1x512xf32>
    %219 = tpu.matmul %217, %218, %cst_83 {dimension_numbers = #tpu.dot_dimension_numbers<[1], [0], [0], [1], [0, 0, 1, 1], [], []>} : vector<1x128xbf16>, vector<128x512xbf16>, vector<1x512xf32> -> vector<1x512xf32>
    %220 = arith.addf %216, %219 : vector<1x512xf32>
    %221 = math.tanh %220 : vector<1x512xf32>
    %222 = vector.extract_strided_slice %221 {offsets = [0, 0], sizes = [1, 128], strides = [1, 1]} : vector<1x512xf32> to vector<1x128xf32>
    %cst_84 = arith.constant 1.000000e+00 : f32
    %223 = vector.broadcast %cst_84 : f32 to vector<1x128xf32>
    %224 = arith.addf %222, %223 : vector<1x128xf32>
    %cst_85 = arith.constant 5.000000e-01 : f32
    %225 = vector.broadcast %cst_85 : f32 to vector<1x128xf32>
    %226 = arith.mulf %225, %224 : vector<1x128xf32>
    %227 = vector.extract_strided_slice %221 {offsets = [0, 128], sizes = [1, 128], strides = [1, 1]} : vector<1x512xf32> to vector<1x128xf32>
    %cst_86 = arith.constant 1.000000e+00 : f32
    %228 = vector.broadcast %cst_86 : f32 to vector<1x128xf32>
    %229 = arith.addf %227, %228 : vector<1x128xf32>
    %cst_87 = arith.constant 5.000000e-01 : f32
    %230 = vector.broadcast %cst_87 : f32 to vector<1x128xf32>
    %231 = arith.mulf %230, %229 : vector<1x128xf32>
    %232 = vector.extract_strided_slice %221 {offsets = [0, 256], sizes = [1, 128], strides = [1, 1]} : vector<1x512xf32> to vector<1x128xf32>
    %233 = vector.extract_strided_slice %221 {offsets = [0, 384], sizes = [1, 128], strides = [1, 1]} : vector<1x512xf32> to vector<1x128xf32>
    %cst_88 = arith.constant 1.000000e+00 : f32
    %234 = vector.broadcast %cst_88 : f32 to vector<1x128xf32>
    %235 = arith.addf %233, %234 : vector<1x128xf32>
    %cst_89 = arith.constant 5.000000e-01 : f32
    %236 = vector.broadcast %cst_89 : f32 to vector<1x128xf32>
    %237 = arith.mulf %236, %235 : vector<1x128xf32>
    %238 = arith.mulf %231, %211 : vector<1x128xf32>
    %239 = arith.mulf %226, %232 : vector<1x128xf32>
    %240 = arith.addf %238, %239 : vector<1x128xf32>
    %241 = math.tanh %240 : vector<1x128xf32>
    %242 = arith.mulf %237, %241 : vector<1x128xf32>
    %c1_i32_90 = arith.constant 1 : i32
    %c0_91 = arith.constant 0 : index
    %c0_92 = arith.constant 0 : index
    %243 = vector.load %arg4[%c0_91, %c0_92] : memref<128x128xf32, #tpu.memory_space<vmem>>, vector<128x128xf32>
    %cst_93 = arith.constant dense<0.000000e+00> : vector<1x128xf32>
    %244 = tpu.matmul %242, %243, %cst_93 {dimension_numbers = #tpu.dot_dimension_numbers<[1], [0], [0], [1], [0, 0, 1, 1], [], []>} : vector<1x128xf32>, vector<128x128xf32>, vector<1x128xf32> -> vector<1x128xf32>
    %c0_94 = arith.constant 0 : index
    %c0_95 = arith.constant 0 : index
    %245 = vector.load %arg5[%c0_94, %c0_95] : memref<1x128xf32, #tpu.memory_space<vmem>>, vector<1x128xf32>
    %246 = arith.addf %244, %245 : vector<1x128xf32>
    %c0_96 = arith.constant 0 : index
    %c0_97 = arith.constant 0 : index
    %247 = vector.load %arg7[%c0_96, %c0_97] : memref<1x128xf32, #tpu.memory_space<vmem>>, vector<1x128xf32>
    tpu.vector_store %arg7[%c0_96, %c0_97], %246 {strides = array<i32>} : memref<1x128xf32, #tpu.memory_space<vmem>>, vector<1x128xf32>,
    tpu.wait_dma2 semaphore(%arg11 : memref<!tpu.dma_semaphore, #tpu.memory_space<semaphore_mem>>) src(%arg6 : memref<128x256xbf16, #tpu.memory_space<any>>) dst(%arg10 : memref<128x256xbf16, #tpu.memory_space<vmem>>)
    %248 = arith.truncf %246 : vector<1x128xf32> to vector<1x128xbf16>
    %c0_98 = arith.constant 0 : index
    %c0_99 = arith.constant 0 : index
    %249 = vector.load %arg10[%c0_98, %c0_99] : memref<128x256xbf16, #tpu.memory_space<vmem>>, vector<128x256xbf16>
    %cst_100 = arith.constant dense<0.000000e+00> : vector<1x256xf32>
    %250 = tpu.matmul %248, %249, %cst_100 {dimension_numbers = #tpu.dot_dimension_numbers<[1], [0], [0], [1], [0, 0, 1, 1], [], []>} : vector<1x128xbf16>, vector<128x256xbf16>, vector<1x256xf32> -> vector<1x256xf32>
    %c0_101 = arith.constant 0 : index
    %c0_102 = arith.constant 0 : index
    %251 = vector.load %arg8[%c0_101, %c0_102] : memref<1x256xf32, #tpu.memory_space<vmem>>, vector<1x256xf32>
    tpu.vector_store %arg8[%c0_101, %c0_102], %250 {strides = array<i32>} : memref<1x256xf32, #tpu.memory_space<vmem>>, vector<1x256xf32>,
    return
  }
}

</mosaic_0001>

<bundles_post_ra>
// kernel: coconut_forward.1
= control target key start
LH: loop header
LB: loop body
LE: loop exit
PB: predicated region body
PF: predicated region fallthrough
CT: control target
= control target key end

     0   :  { %14 = vsyncpa [#allocation6], 0  ;;  %s2661_s0 = inlined_call_operand.vmem [shape: f32[8,128], index: 0, kind: input, shape index: {}]   ;;  %s2662_s1 = inlined_call_operand.vmem [shape: f32[128,512], index: 1, kind: input, shape index: {}]   ;;  %s2663_s2 = inlined_call_operand.vmem [shape: bf16[128,512], index: 2, kind: input, shape index: {}]   ;;  %s2664_s3 = inlined_call_operand.vmem [shape: f32[1,512], index: 3, kind: input, shape index: {}]   ;;  %s2665_s4 = inlined_call_operand.vmem [shape: f32[128,128], index: 4, kind: input, shape index: {}]   ;;  %s2666_s5 = inlined_call_operand.vmem [shape: f32[1,128], index: 5, kind: input, shape index: {}]   ;;  %s2667_s6 = inlined_call_operand.vmem [shape: bf16[128,256], index: 6, kind: input, shape index: {}]   ;;  %s2668_s7 = inlined_call_operand.hbm [shape: f32[1,128], index: 7, kind: output, shape index: {0}]   ;;  %s2669_s8 = inlined_call_operand.hbm [shape: f32[1,256], index: 8, kind: output, shape index: {1}]  }
   0x1   :  { %15 = vsyncpa [#allocation8], 0  ;;  %v39_v0 = vld [vmem:[%s2667_s6] sm:$0xff]  ;;  %v41_v1 = vld [vmem:[%s2667_s6 + $0x8] sm:$0xff] }
   0x2   :  { %40 = vst [vmem:[#allocation3] sm:$0xff] %v39_v0  ;;  %v43_v2 = vld [vmem:[%s2667_s6 + $0x10] sm:$0xff]  ;;  %v45_v3 = vld [vmem:[%s2667_s6 + $0x18] sm:$0xff]  ;;  %v47_v4 = vld [vmem:[%s2667_s6 + $0x20] sm:$0xff] }
   0x3   :  { %42 = vst [vmem:[#allocation3 + $0x8] sm:$0xff] %v41_v1  ;;  %v49_v5 = vld [vmem:[%s2667_s6 + $0x28] sm:$0xff]  ;;  %v51_v6 = vld [vmem:[%s2667_s6 + $0x30] sm:$0xff]  ;;  %v53_v7 = vld [vmem:[%s2667_s6 + $0x38] sm:$0xff] }
   0x4   :  { %44 = vst [vmem:[#allocation3 + $0x10] sm:$0xff] %v43_v2  ;;  %v55_v8 = vld [vmem:[%s2667_s6 + $0x40] sm:$0xff]  ;;  %v57_v9 = vld [vmem:[%s2667_s6 + $0x48] sm:$0xff]  ;;  %v59_v10 = vld [vmem:[%s2667_s6 + $0x50] sm:$0xff] }
   0x5   :  { %46 = vst [vmem:[#allocation3 + $0x18] sm:$0xff] %v45_v3  ;;  %v61_v11 = vld [vmem:[%s2667_s6 + $0x58] sm:$0xff]  ;;  %v63_v12 = vld [vmem:[%s2667_s6 + $0x60] sm:$0xff]  ;;  %v65_v13 = vld [vmem:[%s2667_s6 + $0x68] sm:$0xff] }
   0x6   :  { %48 = vst [vmem:[#allocation3 + $0x20] sm:$0xff] %v47_v4  ;;  %v67_v14 = vld [vmem:[%s2667_s6 + $0x70] sm:$0xff]  ;;  %v69_v15 = vld [vmem:[%s2667_s6 + $0x78] sm:$0xff] }
   0x7   :  { %50 = vst [vmem:[#allocation3 + $0x28] sm:$0xff] %v49_v5 }
   0x8   :  { %52 = vst [vmem:[#allocation3 + $0x30] sm:$0xff] %v51_v6 }
   0x9   :  { %54 = vst [vmem:[#allocation3 + $0x38] sm:$0xff] %v53_v7 }
   0xa   :  { %56 = vst [vmem:[#allocation3 + $0x40] sm:$0xff] %v55_v8 }
   0xb   :  { %58 = vst [vmem:[#allocation3 + $0x48] sm:$0xff] %v57_v9 }
   0xc   :  { %60 = vst [vmem:[#allocation3 + $0x50] sm:$0xff] %v59_v10 }
   0xd   :  { %62 = vst [vmem:[#allocation3 + $0x58] sm:$0xff] %v61_v11 }
   0xe   :  { %64 = vst [vmem:[#allocation3 + $0x60] sm:$0xff] %v63_v12 }
   0xf   :  { %66 = vst [vmem:[#allocation3 + $0x68] sm:$0xff] %v65_v13 }
  0x10   :  { %68 = vst [vmem:[#allocation3 + $0x70] sm:$0xff] %v67_v14 }
  0x11   :  { %70 = vst [vmem:[#allocation3 + $0x78] sm:$0xff] %v69_v15 }
  0x12   :  { %76 = vsyncadd [#allocation4], 2048  ;;  %v138_v16 = vld [vmem:[%s2662_s1 + $0x1e0] sm:$0xff]  ;;  %v139_v17 = vld [vmem:[%s2662_s1 + $0x1e8] sm:$0xff]  ;;  %vm491_vm0 = vcmask 1040384   ;;  %vm493_vm1 = vcmask 1042434  }
  0x13   :  { %152 = vmatpush.msra.mxu0 %v138_v16  ;;  %172 = vmatpush.msra.mxu1 %v139_v17  ;;  %v140_v18 = vld [vmem:[%s2662_s1 + $0x1f0] sm:$0xff]  ;;  %v141_v19 = vld [vmem:[%s2662_s1 + $0x1f8] sm:$0xff]  ;;  %v134_v20 = vld [vmem:[%s2662_s1 + $0x1c0] sm:$0xff]  ;;  %vm495_vm2 = vcmask 1041408  }
  0x14   :  { %192 = vmatpush.msra.mxu2 %v140_v18  ;;  %212 = vmatpush.msra.mxu3 %v141_v19  ;;  %v135_v21 = vld [vmem:[%s2662_s1 + $0x1c8] sm:$0xff]  ;;  %v136_v22 = vld [vmem:[%s2662_s1 + $0x1d0] sm:$0xff]  ;;  %v137_v23 = vld [vmem:[%s2662_s1 + $0x1d8] sm:$0xff] }
  0x15   :  { %153 = vmatpush.msra.mxu0 %v134_v20  ;;  %173 = vmatpush.msra.mxu1 %v135_v21  ;;  %v130_v24 = vld [vmem:[%s2662_s1 + $0x1a0] sm:$0xff]  ;;  %v131_v25 = vld [vmem:[%s2662_s1 + $0x1a8] sm:$0xff]  ;;  %v132_v26 = vld [vmem:[%s2662_s1 + $0x1b0] sm:$0xff] }
  0x16   :  { %193 = vmatpush.msra.mxu2 %v136_v22  ;;  %213 = vmatpush.msra.mxu3 %v137_v23  ;;  %v133_v27 = vld [vmem:[%s2662_s1 + $0x1b8] sm:$0xff]  ;;  %v126_v28 = vld [vmem:[%s2662_s1 + $0x180] sm:$0xff]  ;;  %v127_v29 = vld [vmem:[%s2662_s1 + $0x188] sm:$0xff] }
  0x17   :  { %154 = vmatpush.msra.mxu0 %v130_v24  ;;  %174 = vmatpush.msra.mxu1 %v131_v25  ;;  %v128_v30 = vld [vmem:[%s2662_s1 + $0x190] sm:$0xff]  ;;  %v129_v31 = vld [vmem:[%s2662_s1 + $0x198] sm:$0xff]  ;;  %v122_v32 = vld [vmem:[%s2662_s1 + $0x160] sm:$0xff] }
  0x18   :  { %194 = vmatpush.msra.mxu2 %v132_v26  ;;  %214 = vmatpush.msra.mxu3 %v133_v27  ;;  %v123_v33 = vld [vmem:[%s2662_s1 + $0x168] sm:$0xff]  ;;  %v124_v34 = vld [vmem:[%s2662_s1 + $0x170] sm:$0xff]  ;;  %v125_v35 = vld [vmem:[%s2662_s1 + $0x178] sm:$0xff] }
  0x19   :  { %155 = vmatpush.msra.mxu0 %v126_v28  ;;  %175 = vmatpush.msra.mxu1 %v127_v29  ;;  %v118_v36 = vld [vmem:[%s2662_s1 + $0x140] sm:$0xff]  ;;  %v119_v37 = vld [vmem:[%s2662_s1 + $0x148] sm:$0xff]  ;;  %v120_v38 = vld [vmem:[%s2662_s1 + $0x150] sm:$0xff] }
  0x1a   :  { %195 = vmatpush.msra.mxu2 %v128_v30  ;;  %215 = vmatpush.msra.mxu3 %v129_v31  ;;  %v121_v39 = vld [vmem:[%s2662_s1 + $0x158] sm:$0xff]  ;;  %v114_v40 = vld [vmem:[%s2662_s1 + $0x120] sm:$0xff]  ;;  %v115_v41 = vld [vmem:[%s2662_s1 + $0x128] sm:$0xff] }
  0x1b   :  { %156 = vmatpush.msra.mxu0 %v122_v32  ;;  %176 = vmatpush.msra.mxu1 %v123_v33  ;;  %v116_v42 = vld [vmem:[%s2662_s1 + $0x130] sm:$0xff]  ;;  %v117_v43 = vld [vmem:[%s2662_s1 + $0x138] sm:$0xff]  ;;  %v110_v44 = vld [vmem:[%s2662_s1 + $0x100] sm:$0xff] }
  0x1c   :  { %196 = vmatpush.msra.mxu2 %v124_v34  ;;  %216 = vmatpush.msra.mxu3 %v125_v35  ;;  %v111_v45 = vld [vmem:[%s2662_s1 + $0x108] sm:$0xff]  ;;  %v112_v46 = vld [vmem:[%s2662_s1 + $0x110] sm:$0xff]  ;;  %v113_v47 = vld [vmem:[%s2662_s1 + $0x118] sm:$0xff] }
  0x1d   :  { %157 = vmatpush.msra.mxu0 %v118_v36  ;;  %177 = vmatpush.msra.mxu1 %v119_v37  ;;  %v106_v48 = vld [vmem:[%s2662_s1 + $0xe0] sm:$0xff]  ;;  %v107_v49 = vld [vmem:[%s2662_s1 + $0xe8] sm:$0xff]  ;;  %v108_v50 = vld [vmem:[%s2662_s1 + $0xf0] sm:$0xff] }
  0x1e   :  { %197 = vmatpush.msra.mxu2 %v120_v38  ;;  %217 = vmatpush.msra.mxu3 %v121_v39  ;;  %v109_v51 = vld [vmem:[%s2662_s1 + $0xf8] sm:$0xff]  ;;  %v102_v52 = vld [vmem:[%s2662_s1 + $0xc0] sm:$0xff]  ;;  %v103_v53 = vld [vmem:[%s2662_s1 + $0xc8] sm:$0xff] }
  0x1f   :  { %158 = vmatpush.msra.mxu0 %v114_v40  ;;  %178 = vmatpush.msra.mxu1 %v115_v41  ;;  %v104_v54 = vld [vmem:[%s2662_s1 + $0xd0] sm:$0xff]  ;;  %v105_v55 = vld [vmem:[%s2662_s1 + $0xd8] sm:$0xff]  ;;  %v98_v56 = vld [vmem:[%s2662_s1 + $0xa0] sm:$0xff] }
  0x20   :  { %198 = vmatpush.msra.mxu2 %v116_v42  ;;  %218 = vmatpush.msra.mxu3 %v117_v43  ;;  %v99_v57 = vld [vmem:[%s2662_s1 + $0xa8] sm:$0xff]  ;;  %v100_v58 = vld [vmem:[%s2662_s1 + $0xb0] sm:$0xff]  ;;  %v101_v59 = vld [vmem:[%s2662_s1 + $0xb8] sm:$0xff] }
  0x21   :  { %159 = vmatpush.msra.mxu0 %v110_v44  ;;  %179 = vmatpush.msra.mxu1 %v111_v45  ;;  %v94_v60 = vld [vmem:[%s2662_s1 + $0x80] sm:$0xff]  ;;  %v95_v61 = vld [vmem:[%s2662_s1 + $0x88] sm:$0xff]  ;;  %v96_v62 = vld [vmem:[%s2662_s1 + $0x90] sm:$0xff] }
  0x22   :  { %199 = vmatpush.msra.mxu2 %v112_v46  ;;  %219 = vmatpush.msra.mxu3 %v113_v47  ;;  %v97_v63 = vld [vmem:[%s2662_s1 + $0x98] sm:$0xff]  ;;  %v90_v0 = vld [vmem:[%s2662_s1 + $0x60] sm:$0xff]  ;;  %v91_v1 = vld [vmem:[%s2662_s1 + $0x68] sm:$0xff] }
  0x23   :  { %160 = vmatpush.msra.mxu0 %v106_v48  ;;  %180 = vmatpush.msra.mxu1 %v107_v49  ;;  %v92_v2 = vld [vmem:[%s2662_s1 + $0x70] sm:$0xff]  ;;  %v93_v3 = vld [vmem:[%s2662_s1 + $0x78] sm:$0xff]  ;;  %v86_v4 = vld [vmem:[%s2662_s1 + $0x40] sm:$0xff] }
  0x24   :  { %200 = vmatpush.msra.mxu2 %v108_v50  ;;  %220 = vmatpush.msra.mxu3 %v109_v51  ;;  %v87_v5 = vld [vmem:[%s2662_s1 + $0x48] sm:$0xff]  ;;  %v88_v6 = vld [vmem:[%s2662_s1 + $0x50] sm:$0xff]  ;;  %v89_v7 = vld [vmem:[%s2662_s1 + $0x58] sm:$0xff] }
  0x25   :  { %161 = vmatpush.msra.mxu0 %v102_v52  ;;  %181 = vmatpush.msra.mxu1 %v103_v53  ;;  %v82_v8 = vld [vmem:[%s2662_s1 + $0x20] sm:$0xff]  ;;  %v83_v9 = vld [vmem:[%s2662_s1 + $0x28] sm:$0xff]  ;;  %v84_v10 = vld [vmem:[%s2662_s1 + $0x30] sm:$0xff] }
  0x26   :  { %201 = vmatpush.msra.mxu2 %v104_v54  ;;  %221 = vmatpush.msra.mxu3 %v105_v55  ;;  %v85_v11 = vld [vmem:[%s2662_s1 + $0x38] sm:$0xff]  ;;  %v1528_v12 = vld [vmem:[%s2663_s2 + $0xe0] sm:$0xf]  ;;  %v1637_v13 = vld [vmem:[%s2663_s2 + $0xec] sm:$0xf0] }
  0x27   :  { %162 = vmatpush.msra.mxu0 %v98_v56  ;;  %182 = vmatpush.msra.mxu1 %v99_v57  ;;  %v1635_v14 = vld [vmem:[%s2663_s2 + $0xe4] sm:$0xf]  ;;  %v1530_v15 = vld [vmem:[%s2663_s2 + $0xf0] sm:$0xf0]  ;;  %v1536_v16 = vld [vmem:[%s2663_s2 + $0xe8] sm:$0xf]  ;;  %v2056_v24 = vor.u32 %v1637_v13, %v1528_v12 }
  0x28   :  { %202 = vmatpush.msra.mxu2 %v100_v58  ;;  %222 = vmatpush.msra.mxu3 %v101_v59  ;;  %v1638_v17 = vld [vmem:[%s2663_s2 + $0xf4] sm:$0xf0]  ;;  %v1636_v18 = vld [vmem:[%s2663_s2 + $0xec] sm:$0xf]  ;;  %v1538_v19 = vld [vmem:[%s2663_s2 + $0xf8] sm:$0xf0]  ;;  %v2058_v25 = vor.u32 %v1635_v14, %v1530_v15 }
  0x29   :  { %163 = vmatpush.msra.mxu0 %v94_v60  ;;  %183 = vmatpush.msra.mxu1 %v95_v61  ;;  %v78_v20 = vld [vmem:[%s2662_s1] sm:$0xff]  ;;  %v79_v21 = vld [vmem:[%s2662_s1 + $0x8] sm:$0xff]  ;;  %v80_v22 = vld [vmem:[%s2662_s1 + $0x10] sm:$0xff]  ;;  %v2066_v28 = vor.u32 %v1638_v17, %v1536_v16  ;;  %v2068_v29 = vor.u32 %v1636_v18, %v1538_v19 }
  0x2a   :  { %203 = vmatpush.msra.mxu2 %v96_v62  ;;  %223 = vmatpush.msra.mxu3 %v97_v63  ;;  %v81_v23 = vld [vmem:[%s2662_s1 + $0x18] sm:$0xff]  ;;  %v1512_v26 = vld [vmem:[%s2663_s2 + $0xc0] sm:$0xf]  ;;  %v1633_v27 = vld [vmem:[%s2663_s2 + $0xcc] sm:$0xf0] }
  0x2b   :  { %164 = vmatpush.msra.mxu0 %v90_v0  ;;  %184 = vmatpush.msra.mxu1 %v91_v1  ;;  %v1631_v30 = vld [vmem:[%s2663_s2 + $0xc4] sm:$0xf]  ;;  %v1514_v31 = vld [vmem:[%s2663_s2 + $0xd0] sm:$0xf0]  ;;  %v1520_v32 = vld [vmem:[%s2663_s2 + $0xc8] sm:$0xf]  ;;  %v2090_v36 = vor.u32 %v1633_v27, %v1512_v26 }
  0x2c   :  { %204 = vmatpush.msra.mxu2 %v92_v2  ;;  %224 = vmatpush.msra.mxu3 %v93_v3  ;;  %v1634_v33 = vld [vmem:[%s2663_s2 + $0xd4] sm:$0xf0]  ;;  %v1632_v34 = vld [vmem:[%s2663_s2 + $0xcc] sm:$0xf]  ;;  %v1522_v35 = vld [vmem:[%s2663_s2 + $0xd8] sm:$0xf0]  ;;  %v2092_v37 = vor.u32 %v1631_v30, %v1514_v31 }
  0x2d   :  { %165 = vmatpush.msra.mxu0 %v86_v4  ;;  %185 = vmatpush.msra.mxu1 %v87_v5  ;;  %v1496_v38 = vld [vmem:[%s2663_s2 + $0xa0] sm:$0xf]  ;;  %v1629_v39 = vld [vmem:[%s2663_s2 + $0xac] sm:$0xf0]  ;;  %v2102_v40 = vor.u32 %v1634_v33, %v1520_v32  ;;  %v2104_v41 = vor.u32 %v1632_v34, %v1522_v35  ;;  %v1627_v42 = vld [vmem:[%s2663_s2 + $0xa4] sm:$0xf] }
  0x2e   :  { %205 = vmatpush.msra.mxu2 %v88_v6  ;;  %225 = vmatpush.msra.mxu3 %v89_v7  ;;  %v1498_v43 = vld [vmem:[%s2663_s2 + $0xb0] sm:$0xf0]  ;;  %v1504_v44 = vld [vmem:[%s2663_s2 + $0xa8] sm:$0xf]  ;;  %v1630_v45 = vld [vmem:[%s2663_s2 + $0xb4] sm:$0xf0]  ;;  %v2126_v48 = vor.u32 %v1629_v39, %v1496_v38 }
  0x2f   :  { %166 = vmatpush.msra.mxu0 %v82_v8  ;;  %186 = vmatpush.msra.mxu1 %v83_v9  ;;  %v1628_v46 = vld [vmem:[%s2663_s2 + $0xac] sm:$0xf]  ;;  %v1506_v47 = vld [vmem:[%s2663_s2 + $0xb8] sm:$0xf0]  ;;  %v2128_v49 = vor.u32 %v1627_v42, %v1498_v43  ;;  %v1480_v50 = vld [vmem:[%s2663_s2 + $0x80] sm:$0xf]  ;;  %v2141_v53 = vor.u32 %v1630_v45, %v1504_v44 }
  0x30   :  { %206 = vmatpush.msra.mxu2 %v84_v10  ;;  %226 = vmatpush.msra.mxu3 %v85_v11  ;;  %v1625_v51 = vld [vmem:[%s2663_s2 + $0x8c] sm:$0xf0]  ;;  %v77_v52 = vld [vmem:[%s2661_s0] sm:$0xff]  ;;  %v2143_v54 = vor.u32 %v1628_v46, %v1506_v47  ;;  %v1482_v56 = vld [vmem:[%s2663_s2 + $0x90] sm:$0xf0] }
  0x31   :  { %167 = vmatpush.msra.mxu0 %v78_v20  ;;  %187 = vmatpush.msra.mxu1 %v79_v21  ;;  %v1623_v55 = vld [vmem:[%s2663_s2 + $0x84] sm:$0xf]  ;;  %v1488_v57 = vld [vmem:[%s2663_s2 + $0x88] sm:$0xf]  ;;  %v1626_v58 = vld [vmem:[%s2663_s2 + $0x94] sm:$0xf0]  ;;  %v2165_v61 = vor.u32 %v1625_v51, %v1480_v50 }
  0x32   :  { %207 = vmatpush.msra.mxu2 %v80_v22  ;;  %227 = vmatpush.msra.mxu3 %v81_v23  ;;  %v1624_v59 = vld [vmem:[%s2663_s2 + $0x8c] sm:$0xf]  ;;  %v1490_v60 = vld [vmem:[%s2663_s2 + $0x98] sm:$0xf0]  ;;  %v2167_v62 = vor.u32 %v1623_v55, %v1482_v56  ;;  %v1464_v63 = vld [vmem:[%s2663_s2 + $0x60] sm:$0xf]  ;;  %v2177_v1 = vor.u32 %v1626_v58, %v1488_v57 }
  0x33   :  { %432 = vmatpush.bf16.msrb.mxu0 %v2056_v24  ;;  %445 = vmatpush.bf16.msrb.mxu1 %v2058_v25  ;;  %v1621_v0 = vld [vmem:[%s2663_s2 + $0x6c] sm:$0xf0]  ;;  %v2179_v2 = vor.u32 %v1624_v59, %v1490_v60  ;;  %v1619_v3 = vld [vmem:[%s2663_s2 + $0x64] sm:$0xf]  ;;  %v1466_v4 = vld [vmem:[%s2663_s2 + $0x70] sm:$0xf0] }
  0x34   :  { %458 = vmatpush.bf16.msrb.mxu2 %v2066_v28  ;;  %471 = vmatpush.bf16.msrb.mxu3 %v2068_v29  ;;  %v1472_v5 = vld [vmem:[%s2663_s2 + $0x68] sm:$0xf]  ;;  %v1622_v6 = vld [vmem:[%s2663_s2 + $0x74] sm:$0xf0]  ;;  %v1620_v7 = vld [vmem:[%s2663_s2 + $0x6c] sm:$0xf]  ;;  %v2201_v9 = vor.u32 %v1621_v0, %v1464_v63  ;;  %v2203_v10 = vor.u32 %v1619_v3, %v1466_v4 }
  0x35   :  { %168 = vmatmul.f32.vlgmr.msra.gmra.mxu0 %v77_v52  ;;  %188 = vmatmul.f32.vlgmr.msra.gmra.mxu1 %v77_v52  ;;  %v1474_v8 = vld [vmem:[%s2663_s2 + $0x78] sm:$0xf0]  ;;  %v1448_v11 = vld [vmem:[%s2663_s2 + $0x40] sm:$0xf]  ;;  %v1617_v12 = vld [vmem:[%s2663_s2 + $0x4c] sm:$0xf0]  ;;  %v2213_v13 = vor.u32 %v1622_v6, %v1472_v5 }
  0x36   :  { %208 = vmatmul.f32.vlgmr.msra.gmra.mxu2 %v77_v52  ;;  %228 = vmatmul.f32.vlgmr.msra.gmra.mxu3 %v77_v52  ;;  %v2215_v14 = vor.u32 %v1620_v7, %v1474_v8  ;;  %v1615_v15 = vld [vmem:[%s2663_s2 + $0x44] sm:$0xf]  ;;  %v1450_v16 = vld [vmem:[%s2663_s2 + $0x50] sm:$0xf0]  ;;  %v1456_v17 = vld [vmem:[%s2663_s2 + $0x48] sm:$0xf]  ;;  %v2237_v21 = vor.u32 %v1617_v12, %v1448_v11 }
  0x37   :  { %433 = vmatpush.bf16.msrb.mxu0 %v2090_v36  ;;  %446 = vmatpush.bf16.msrb.mxu1 %v2092_v37  ;;  %v1618_v18 = vld [vmem:[%s2663_s2 + $0x54] sm:$0xf0]  ;;  %v1616_v19 = vld [vmem:[%s2663_s2 + $0x4c] sm:$0xf]  ;;  %v1458_v20 = vld [vmem:[%s2663_s2 + $0x58] sm:$0xf0]  ;;  %v2239_v22 = vor.u32 %v1615_v15, %v1450_v16 }
  0x38   :  { %459 = vmatpush.bf16.msrb.mxu2 %v2102_v40  ;;  %472 = vmatpush.bf16.msrb.mxu3 %v2104_v41  ;;  %v1432_v23 = vld [vmem:[%s2663_s2 + $0x20] sm:$0xf]  ;;  %v1613_v26 = vld [vmem:[%s2663_s2 + $0x2c] sm:$0xf0]  ;;  %v2249_v27 = vor.u32 %v1618_v18, %v1456_v17  ;;  %v2251_v30 = vor.u32 %v1616_v19, %v1458_v20  ;;  %v1611_v31 = vld [vmem:[%s2663_s2 + $0x24] sm:$0xf] }
  0x39   :  { %v1434_v32 = vld [vmem:[%s2663_s2 + $0x30] sm:$0xf0]  ;;  %v1440_v33 = vld [vmem:[%s2663_s2 + $0x28] sm:$0xf]  ;;  %v1614_v34 = vld [vmem:[%s2663_s2 + $0x34] sm:$0xf0]  ;;  %v2273_v39 = vor.u32 %v1613_v26, %v1432_v23 }
  0x3a   :  { %v1612_v35 = vld [vmem:[%s2663_s2 + $0x2c] sm:$0xf]  ;;  %v1442_v38 = vld [vmem:[%s2663_s2 + $0x38] sm:$0xf0]  ;;  %v2275_v42 = vor.u32 %v1611_v31, %v1434_v32  ;;  %v1416_v43 = vld [vmem:[%s2663_s2] sm:$0xf]  ;;  %v2285_v45 = vor.u32 %v1614_v34, %v1440_v33 }
  0x3b   :  { %434 = vmatpush.bf16.msrb.mxu0 %v2126_v48  ;;  %447 = vmatpush.bf16.msrb.mxu1 %v2128_v49  ;;  %v1609_v44 = vld [vmem:[%s2663_s2 + $0xc] sm:$0xf0]  ;;  %v2287_v46 = vor.u32 %v1612_v35, %v1442_v38  ;;  %v1607_v47 = vld [vmem:[%s2663_s2 + $0x4] sm:$0xf]  ;;  %v1418_v50 = vld [vmem:[%s2663_s2 + $0x10] sm:$0xf0] }
  0x3c   :  { %460 = vmatpush.bf16.msrb.mxu2 %v2141_v53  ;;  %473 = vmatpush.bf16.msrb.mxu3 %v2143_v54  ;;  %v1424_v51 = vld [vmem:[%s2663_s2 + $0x8] sm:$0xf]  ;;  %v1610_v52 = vld [vmem:[%s2663_s2 + $0x14] sm:$0xf0]  ;;  %v1608_v55 = vld [vmem:[%s2663_s2 + $0xc] sm:$0xf]  ;;  %v2309_v57 = vor.u32 %v1609_v44, %v1416_v43  ;;  %v2311_v58 = vor.u32 %v1607_v47, %v1418_v50 }
  0x3d   :  { %v1426_v56 = vld [vmem:[%s2663_s2 + $0x18] sm:$0xf0]  ;;  %v2315_v59 = vor.u32 %v1610_v52, %v1424_v51  ;;  %v1744_v63 = vmov 0   ;;  %v142_v0 = vld [vmem:[%s2664_s3] sm:$0xf] }
  0x3e   :  { %v2317_v60 = vor.u32 %v1608_v55, %v1426_v56  ;;  %v144_v3 = vperm.slane %v142_v0, 0  ;;  %v145_v4 = vperm.slane %v142_v0, 1  ;;  %v146_v11 = vperm.slane %v142_v0, 2 }
  0x3f   :  { %435 = vmatpush.bf16.msrb.mxu0 %v2165_v61  ;;  %448 = vmatpush.bf16.msrb.mxu1 %v2167_v62  ;;  %v147_v12 = vperm.slane %v142_v0, 3 }
  0x40   :  { %461 = vmatpush.bf16.msrb.mxu2 %v2177_v1  ;;  %474 = vmatpush.bf16.msrb.mxu3 %v2179_v2 }
  0x43   :  { %436 = vmatpush.bf16.msrb.mxu0 %v2201_v9  ;;  %449 = vmatpush.bf16.msrb.mxu1 %v2203_v10 }
  0x44   :  { %462 = vmatpush.bf16.msrb.mxu2 %v2213_v13  ;;  %475 = vmatpush.bf16.msrb.mxu3 %v2215_v14 }
  0x47   :  { %437 = vmatpush.bf16.msrb.mxu0 %v2237_v21  ;;  %450 = vmatpush.bf16.msrb.mxu1 %v2239_v22 }
  0x48   :  { %463 = vmatpush.bf16.msrb.mxu2 %v2249_v27  ;;  %476 = vmatpush.bf16.msrb.mxu3 %v2251_v30 }
  0x4b   :  { %438 = vmatpush.bf16.msrb.mxu0 %v2273_v39  ;;  %451 = vmatpush.bf16.msrb.mxu1 %v2275_v42 }
  0x4c   :  { %464 = vmatpush.bf16.msrb.mxu2 %v2285_v45  ;;  %477 = vmatpush.bf16.msrb.mxu3 %v2287_v46 }
  0x4f   :  { %439 = vmatpush.bf16.msrb.mxu0 %v2309_v57  ;;  %452 = vmatpush.bf16.msrb.mxu1 %v2311_v58 }
  0x50   :  { %465 = vmatpush.bf16.msrb.mxu2 %v2315_v59  ;;  %478 = vmatpush.bf16.msrb.mxu3 %v2317_v60 }
  0x52   :  { %440 = vmatmul.bf16.vlgmr.msrb.gmra.mxu0 %v1744_v63  ;;  %453 = vmatmul.bf16.vlgmr.msrb.gmra.mxu1 %v1744_v63 }
  0x53   :  { %529 = vmatpush.bf16.msra.mxu0 %v2056_v24  ;;  %542 = vmatpush.bf16.msra.mxu1 %v2058_v25 }
  0x54   :  { %466 = vmatmul.bf16.vlgmr.msrb.gmra.mxu2 %v1744_v63  ;;  %479 = vmatmul.bf16.vlgmr.msrb.gmra.mxu3 %v1744_v63 }
  0x55   :  { %555 = vmatpush.bf16.msra.mxu2 %v2066_v28  ;;  %568 = vmatpush.bf16.msra.mxu3 %v2068_v29 }
  0x57   :  { %530 = vmatpush.bf16.msra.mxu0 %v2090_v36  ;;  %543 = vmatpush.bf16.msra.mxu1 %v2092_v37 }
  0x59   :  { %556 = vmatpush.bf16.msra.mxu2 %v2102_v40  ;;  %569 = vmatpush.bf16.msra.mxu3 %v2104_v41 }
  0x5b   :  { %531 = vmatpush.bf16.msra.mxu0 %v2126_v48  ;;  %544 = vmatpush.bf16.msra.mxu1 %v2128_v49 }
  0x5d   :  { %557 = vmatpush.bf16.msra.mxu2 %v2141_v53  ;;  %570 = vmatpush.bf16.msra.mxu3 %v2143_v54 }
  0x5f   :  { %532 = vmatpush.bf16.msra.mxu0 %v2165_v61  ;;  %545 = vmatpush.bf16.msra.mxu1 %v2167_v62 }
  0x61   :  { %558 = vmatpush.bf16.msra.mxu2 %v2177_v1  ;;  %571 = vmatpush.bf16.msra.mxu3 %v2179_v2 }
  0x63   :  { %533 = vmatpush.bf16.msra.mxu0 %v2201_v9  ;;  %546 = vmatpush.bf16.msra.mxu1 %v2203_v10 }
  0x65   :  { %559 = vmatpush.bf16.msra.mxu2 %v2213_v13  ;;  %572 = vmatpush.bf16.msra.mxu3 %v2215_v14 }
  0x67   :  { %534 = vmatpush.bf16.msra.mxu0 %v2237_v21  ;;  %547 = vmatpush.bf16.msra.mxu1 %v2239_v22 }
  0x69   :  { %560 = vmatpush.bf16.msra.mxu2 %v2249_v27  ;;  %573 = vmatpush.bf16.msra.mxu3 %v2251_v30 }
  0x6b   :  { %535 = vmatpush.bf16.msra.mxu0 %v2273_v39  ;;  %548 = vmatpush.bf16.msra.mxu1 %v2275_v42 }
  0x6d   :  { %561 = vmatpush.bf16.msra.mxu2 %v2285_v45  ;;  %574 = vmatpush.bf16.msra.mxu3 %v2287_v46 }
  0x6f   :  { %536 = vmatpush.bf16.msra.mxu0 %v2309_v57  ;;  %549 = vmatpush.bf16.msra.mxu1 %v2311_v58 }
  0x71   :  { %562 = vmatpush.bf16.msra.mxu2 %v2315_v59  ;;  %575 = vmatpush.bf16.msra.mxu3 %v2317_v60 }
  0x73   :  { %623 = vmatpush.bf16.msrb.mxu0 %v2056_v24  ;;  %636 = vmatpush.bf16.msrb.mxu1 %v2058_v25 }
  0x75   :  { %649 = vmatpush.bf16.msrb.mxu2 %v2066_v28  ;;  %662 = vmatpush.bf16.msrb.mxu3 %v2068_v29 }
  0x77   :  { %624 = vmatpush.bf16.msrb.mxu0 %v2090_v36  ;;  %637 = vmatpush.bf16.msrb.mxu1 %v2092_v37 }
  0x79   :  { %650 = vmatpush.bf16.msrb.mxu2 %v2102_v40  ;;  %663 = vmatpush.bf16.msrb.mxu3 %v2104_v41 }
  0x7b   :  { %625 = vmatpush.bf16.msrb.mxu0 %v2126_v48  ;;  %638 = vmatpush.bf16.msrb.mxu1 %v2128_v49 }
  0x7d   :  { %651 = vmatpush.bf16.msrb.mxu2 %v2141_v53  ;;  %664 = vmatpush.bf16.msrb.mxu3 %v2143_v54 }
  0x7f   :  { %626 = vmatpush.bf16.msrb.mxu0 %v2165_v61  ;;  %639 = vmatpush.bf16.msrb.mxu1 %v2167_v62 }
  0x81   :  { %652 = vmatpush.bf16.msrb.mxu2 %v2177_v1  ;;  %665 = vmatpush.bf16.msrb.mxu3 %v2179_v2 }
  0x83   :  { %627 = vmatpush.bf16.msrb.mxu0 %v2201_v9  ;;  %640 = vmatpush.bf16.msrb.mxu1 %v2203_v10 }
  0x85   :  { %653 = vmatpush.bf16.msrb.mxu2 %v2213_v13  ;;  %666 = vmatpush.bf16.msrb.mxu3 %v2215_v14 }
  0x87   :  { %628 = vmatpush.bf16.msrb.mxu0 %v2237_v21  ;;  %641 = vmatpush.bf16.msrb.mxu1 %v2239_v22 }
  0x89   :  { %654 = vmatpush.bf16.msrb.mxu2 %v2249_v27  ;;  %667 = vmatpush.bf16.msrb.mxu3 %v2251_v30 }
  0x8b   :  { %629 = vmatpush.bf16.msrb.mxu0 %v2273_v39  ;;  %642 = vmatpush.bf16.msrb.mxu1 %v2275_v42 }
  0x8d   :  { %655 = vmatpush.bf16.msrb.mxu2 %v2285_v45  ;;  %668 = vmatpush.bf16.msrb.mxu3 %v2287_v46 }
  0x8f   :  { %630 = vmatpush.bf16.msrb.mxu0 %v2309_v57  ;;  %643 = vmatpush.bf16.msrb.mxu1 %v2311_v58 }
  0x91   :  { %656 = vmatpush.bf16.msrb.mxu2 %v2315_v59  ;;  %669 = vmatpush.bf16.msrb.mxu3 %v2317_v60 }
  0xb2   :  { %v169_v5 = vpop.f32.mrf.mxu0  ;;  %v189_v6 = vpop.f32.mrf.mxu1 }
  0xb3   :  { %v170_v7 = vadd.f32 %v169_v5, %v144_v3  ;;  %v190_v8 = vadd.f32 %v189_v6, %v145_v4 }
  0xb5   :  { %232 = vst [vmem:[#allocation2] sm:$0xff] %v170_v7 }
  0xb6   :  { %233 = vst [vmem:[#allocation2 + $0x8] sm:$0xff] %v190_v8 }
  0xb9   :  { %v209_v15 = vpop.f32.mrf.mxu2  ;;  %v229_v16 = vpop.f32.mrf.mxu3 }
  0xba   :  { %v210_v17 = vadd.f32 %v209_v15, %v146_v11  ;;  %v230_v18 = vadd.f32 %v229_v16, %v147_v12 }
  0xbc   :  { %234 = vst [vmem:[#allocation2 + $0x10] sm:$0xff] %v210_v17 }
  0xbd   :  { %235 = vst [vmem:[#allocation2 + $0x18] sm:$0xff] %v230_v18 }
  0xc4   :  { %v239_v44 = vld [vmem:[#allocation2] ss:$8 sm:$0xf] }
  0xcf   :  { %v441_v19 = vpop.f32.mrf.mxu0  ;;  %v454_v20 = vpop.f32.mrf.mxu1 }
  0xd0   :  { %v488_v23 = vrot.slane %v454_v20, 7 }
  0xd2   :  { %v492_v32 = vsel %vm491_vm0, %v441_v19, %v488_v23 }
  0xd7   :  { %v467_v26 = vpop.f32.mrf.mxu2  ;;  %v480_v31 = vpop.f32.mrf.mxu3 }
  0xd8   :  { %v489_v33 = vrot.slane %v467_v26, 6  ;;  %v490_v34 = vrot.slane %v480_v31, 5  ;;  %v443_v35 = vpop.f32.mrf.mxu0  ;;  %v456_v38 = vpop.f32.mrf.mxu1 }
  0xda   :  { %v494_v43 = vsel %vm493_vm1, %v489_v33, %v490_v34 }
  0xdb   :  { %v496_v47 = vsel %vm495_vm2, %v492_v32, %v494_v43 }
  0xdc   :  { %v498_v50 = vadd.f32 %v496_v47, %v239_v44  ;;  %v527_v44 = vld [vmem:[#allocation2 + $0x1] ss:$8 sm:$0xf] }
  0xde   :  { %1658 = vtanh.f32 %v498_v50 }
  0xdf   :  { %v469_v51 = vpop.f32.mrf.mxu2  ;;  %v482_v52 = vpop.f32.mrf.mxu3 }
  0xe4   :  { %v1659_v55 = vpop.eup %1658 }
  0xe5   :  { %v500_v56 = vadd.f32 1.0, %v1659_v55  ;;  %v503_v63 = vrot.slane %v1659_v55, 1  ;;  %v512_v5 = vrot.slane %v1659_v55, 2  ;;  %v507_v8 = vrot.slane %v1659_v55, 3 }
  0xe7   :  { %v501_v0 = vmul.f32 0.5, %v500_v56  ;;  %v505_v3 = vadd.f32 1.0, %v503_v63  ;;  %v509_v12 = vadd.f32 1.0, %v507_v8 }
  0xe9   :  { %v506_v4 = vmul.f32 0.5, %v505_v3  ;;  %v514_v7 = vmul.f32 %v512_v5, %v501_v0  ;;  %v510_v15 = vmul.f32 0.5, %v509_v12 }
  0xeb   :  { %v511_v6 = vmul.f32 0.0, %v506_v4 }
  0xed   :  { %v2393_v11 = vadd.f32 %v514_v7, %v511_v6 }
  0xef   :  { %1660 = vtanh.f32 %v2393_v11 }
  0xf5   :  { %v1661_v16 = vpop.eup %1660 }
  0xf6   :  { %v517_v17 = vmul.f32 %v1661_v16, %v510_v15 }
  0xf8   :  { %v528_v18 = vpack.c.bf16 %v517_v17, %v517_v17 }
  0xfa   :  { %537 = vmatmul.bf16.vlgmr.msra.gmra.mxu0 %v528_v18  ;;  %550 = vmatmul.bf16.vlgmr.msra.gmra.mxu1 %v528_v18 }
  0xfb   :  { %563 = vmatmul.bf16.vlgmr.msra.gmra.mxu2 %v528_v18  ;;  %576 = vmatmul.bf16.vlgmr.msra.gmra.mxu3 %v528_v18 }
  0xfc   :  { %717 = vmatpush.bf16.msra.mxu0 %v2056_v24  ;;  %730 = vmatpush.bf16.msra.mxu1 %v2058_v25 }
  0xfd   :  { %743 = vmatpush.bf16.msra.mxu2 %v2066_v28  ;;  %756 = vmatpush.bf16.msra.mxu3 %v2068_v29 }
 0x100   :  { %718 = vmatpush.bf16.msra.mxu0 %v2090_v36  ;;  %731 = vmatpush.bf16.msra.mxu1 %v2092_v37 }
 0x101   :  { %744 = vmatpush.bf16.msra.mxu2 %v2102_v40  ;;  %757 = vmatpush.bf16.msra.mxu3 %v2104_v41 }
 0x104   :  { %719 = vmatpush.bf16.msra.mxu0 %v2126_v48  ;;  %732 = vmatpush.bf16.msra.mxu1 %v2128_v49 }
 0x105   :  { %745 = vmatpush.bf16.msra.mxu2 %v2141_v53  ;;  %758 = vmatpush.bf16.msra.mxu3 %v2143_v54 }
 0x108   :  { %720 = vmatpush.bf16.msra.mxu0 %v2165_v61  ;;  %733 = vmatpush.bf16.msra.mxu1 %v2167_v62 }
 0x109   :  { %746 = vmatpush.bf16.msra.mxu2 %v2177_v1  ;;  %759 = vmatpush.bf16.msra.mxu3 %v2179_v2 }
 0x10c   :  { %721 = vmatpush.bf16.msra.mxu0 %v2201_v9  ;;  %734 = vmatpush.bf16.msra.mxu1 %v2203_v10 }
 0x10d   :  { %747 = vmatpush.bf16.msra.mxu2 %v2213_v13  ;;  %760 = vmatpush.bf16.msra.mxu3 %v2215_v14 }
 0x110   :  { %722 = vmatpush.bf16.msra.mxu0 %v2237_v21  ;;  %735 = vmatpush.bf16.msra.mxu1 %v2239_v22 }
 0x111   :  { %748 = vmatpush.bf16.msra.mxu2 %v2249_v27  ;;  %761 = vmatpush.bf16.msra.mxu3 %v2251_v30 }
 0x114   :  { %723 = vmatpush.bf16.msra.mxu0 %v2273_v39  ;;  %736 = vmatpush.bf16.msra.mxu1 %v2275_v42 }
 0x115   :  { %749 = vmatpush.bf16.msra.mxu2 %v2285_v45  ;;  %762 = vmatpush.bf16.msra.mxu3 %v2287_v46 }
 0x118   :  { %724 = vmatpush.bf16.msra.mxu0 %v2309_v57  ;;  %737 = vmatpush.bf16.msra.mxu1 %v2311_v58 }
 0x119   :  { %750 = vmatpush.bf16.msra.mxu2 %v2315_v59  ;;  %763 = vmatpush.bf16.msra.mxu3 %v2317_v60 }
 0x177   :  { %v538_v19 = vpop.f32.mrf.mxu0  ;;  %v551_v20 = vpop.f32.mrf.mxu1 }
 0x178   :  { %v585_v23 = vrot.slane %v551_v20, 7 }
 0x17a   :  { %v588_v38 = vsel %vm491_vm0, %v538_v19, %v585_v23 }
 0x17e   :  { %v564_v26 = vpop.f32.mrf.mxu2  ;;  %v577_v31 = vpop.f32.mrf.mxu3 }
 0x17f   :  { %v586_v32 = vrot.slane %v564_v26, 6  ;;  %v587_v33 = vrot.slane %v577_v31, 5  ;;  %v540_v34 = vpop.f32.mrf.mxu0  ;;  %v553_v35 = vpop.f32.mrf.mxu1 }
 0x181   :  { %v589_v43 = vsel %vm493_vm1, %v586_v32, %v587_v33 }
 0x182   :  { %v590_v47 = vsel %vm495_vm2, %v588_v38, %v589_v43 }
 0x183   :  { %v592_v50 = vadd.f32 %v590_v47, %v527_v44  ;;  %v621_v44 = vld [vmem:[#allocation2 + $0x2] ss:$8 sm:$0xf] }
 0x185   :  { %1662 = vtanh.f32 %v592_v50 }
 0x186   :  { %v566_v51 = vpop.f32.mrf.mxu2  ;;  %v579_v52 = vpop.f32.mrf.mxu3 }
 0x18b   :  { %v1663_v55 = vpop.eup %1662 }
 0x18c   :  { %v594_v56 = vadd.f32 1.0, %v1663_v55  ;;  %v597_v63 = vrot.slane %v1663_v55, 1  ;;  %v606_v5 = vrot.slane %v1663_v55, 2  ;;  %v601_v8 = vrot.slane %v1663_v55, 3 }
 0x18e   :  { %v595_v0 = vmul.f32 0.5, %v594_v56  ;;  %v599_v3 = vadd.f32 1.0, %v597_v63  ;;  %v603_v15 = vadd.f32 1.0, %v601_v8 }
 0x190   :  { %v600_v4 = vmul.f32 0.5, %v599_v3  ;;  %v608_v7 = vmul.f32 %v606_v5, %v595_v0  ;;  %v604_v16 = vmul.f32 0.5, %v603_v15 }
 0x192   :  { %v605_v6 = vmul.f32 %v600_v4, %v2393_v11 }
 0x194   :  { %v2432_v12 = vadd.f32 %v608_v7, %v605_v6 }
 0x196   :  { %1664 = vtanh.f32 %v2432_v12 }
 0x19c   :  { %v1665_v17 = vpop.eup %1664 }
 0x19d   :  { %v611_v18 = vmul.f32 %v1665_v17, %v604_v16 }
 0x19f   :  { %v622_v19 = vpack.c.bf16 %v611_v18, %v611_v18 }
 0x1a1   :  { %631 = vmatmul.bf16.vlgmr.msrb.gmra.mxu0 %v622_v19  ;;  %644 = vmatmul.bf16.vlgmr.msrb.gmra.mxu1 %v622_v19 }
 0x1a2   :  { %657 = vmatmul.bf16.vlgmr.msrb.gmra.mxu2 %v622_v19  ;;  %670 = vmatmul.bf16.vlgmr.msrb.gmra.mxu3 %v622_v19 }
 0x1a3   :  { %811 = vmatpush.bf16.msrb.mxu0 %v2056_v24  ;;  %824 = vmatpush.bf16.msrb.mxu1 %v2058_v25 }
 0x1a4   :  { %837 = vmatpush.bf16.msrb.mxu2 %v2066_v28  ;;  %850 = vmatpush.bf16.msrb.mxu3 %v2068_v29 }
 0x1a7   :  { %812 = vmatpush.bf16.msrb.mxu0 %v2090_v36  ;;  %825 = vmatpush.bf16.msrb.mxu1 %v2092_v37 }
 0x1a8   :  { %838 = vmatpush.bf16.msrb.mxu2 %v2102_v40  ;;  %851 = vmatpush.bf16.msrb.mxu3 %v2104_v41 }
 0x1ab   :  { %813 = vmatpush.bf16.msrb.mxu0 %v2126_v48  ;;  %826 = vmatpush.bf16.msrb.mxu1 %v2128_v49 }
 0x1ac   :  { %839 = vmatpush.bf16.msrb.mxu2 %v2141_v53  ;;  %852 = vmatpush.bf16.msrb.mxu3 %v2143_v54 }
 0x1af   :  { %814 = vmatpush.bf16.msrb.mxu0 %v2165_v61  ;;  %827 = vmatpush.bf16.msrb.mxu1 %v2167_v62 }
 0x1b0   :  { %840 = vmatpush.bf16.msrb.mxu2 %v2177_v1  ;;  %853 = vmatpush.bf16.msrb.mxu3 %v2179_v2 }
 0x1b3   :  { %815 = vmatpush.bf16.msrb.mxu0 %v2201_v9  ;;  %828 = vmatpush.bf16.msrb.mxu1 %v2203_v10 }
 0x1b4   :  { %841 = vmatpush.bf16.msrb.mxu2 %v2213_v13  ;;  %854 = vmatpush.bf16.msrb.mxu3 %v2215_v14 }
 0x1b7   :  { %816 = vmatpush.bf16.msrb.mxu0 %v2237_v21  ;;  %829 = vmatpush.bf16.msrb.mxu1 %v2239_v22 }
 0x1b8   :  { %842 = vmatpush.bf16.msrb.mxu2 %v2249_v27  ;;  %855 = vmatpush.bf16.msrb.mxu3 %v2251_v30 }
 0x1bb   :  { %817 = vmatpush.bf16.msrb.mxu0 %v2273_v39  ;;  %830 = vmatpush.bf16.msrb.mxu1 %v2275_v42 }
 0x1bc   :  { %843 = vmatpush.bf16.msrb.mxu2 %v2285_v45  ;;  %856 = vmatpush.bf16.msrb.mxu3 %v2287_v46 }
 0x1bf   :  { %818 = vmatpush.bf16.msrb.mxu0 %v2309_v57  ;;  %831 = vmatpush.bf16.msrb.mxu1 %v2311_v58 }
 0x1c0   :  { %844 = vmatpush.bf16.msrb.mxu2 %v2315_v59  ;;  %857 = vmatpush.bf16.msrb.mxu3 %v2317_v60 }
 0x21e   :  { %v632_v11 = vpop.f32.mrf.mxu0  ;;  %v645_v20 = vpop.f32.mrf.mxu1 }
 0x21f   :  { %v679_v23 = vrot.slane %v645_v20, 7 }
 0x221   :  { %v682_v38 = vsel %vm491_vm0, %v632_v11, %v679_v23 }
 0x225   :  { %v658_v26 = vpop.f32.mrf.mxu2  ;;  %v671_v31 = vpop.f32.mrf.mxu3 }
 0x226   :  { %v680_v32 = vrot.slane %v658_v26, 6  ;;  %v681_v33 = vrot.slane %v671_v31, 5  ;;  %v634_v34 = vpop.f32.mrf.mxu0  ;;  %v647_v35 = vpop.f32.mrf.mxu1 }
 0x228   :  { %v683_v43 = vsel %vm493_vm1, %v680_v32, %v681_v33 }
 0x229   :  { %v684_v47 = vsel %vm495_vm2, %v682_v38, %v683_v43 }
 0x22a   :  { %v686_v50 = vadd.f32 %v684_v47, %v621_v44  ;;  %v715_v44 = vld [vmem:[#allocation2 + $0x3] ss:$8 sm:$0xf] }
 0x22c   :  { %1666 = vtanh.f32 %v686_v50 }
 0x22d   :  { %v660_v51 = vpop.f32.mrf.mxu2  ;;  %v673_v52 = vpop.f32.mrf.mxu3 }
 0x232   :  { %v1667_v55 = vpop.eup %1666 }
 0x233   :  { %v688_v56 = vadd.f32 1.0, %v1667_v55  ;;  %v691_v63 = vrot.slane %v1667_v55, 1  ;;  %v700_v5 = vrot.slane %v1667_v55, 2  ;;  %v695_v8 = vrot.slane %v1667_v55, 3 }
 0x235   :  { %v689_v0 = vmul.f32 0.5, %v688_v56  ;;  %v693_v3 = vadd.f32 1.0, %v691_v63  ;;  %v697_v16 = vadd.f32 1.0, %v695_v8 }
 0x237   :  { %v694_v4 = vmul.f32 0.5, %v693_v3  ;;  %v702_v7 = vmul.f32 %v700_v5, %v689_v0  ;;  %v698_v17 = vmul.f32 0.5, %v697_v16 }
 0x239   :  { %v699_v6 = vmul.f32 %v694_v4, %v2432_v12 }
 0x23b   :  { %v2471_v15 = vadd.f32 %v702_v7, %v699_v6 }
 0x23d   :  { %1668 = vtanh.f32 %v2471_v15 }
 0x243   :  { %v1669_v18 = vpop.eup %1668 }
 0x244   :  { %v705_v19 = vmul.f32 %v1669_v18, %v698_v17 }
 0x246   :  { %v716_v11 = vpack.c.bf16 %v705_v19, %v705_v19 }
 0x248   :  { %725 = vmatmul.bf16.vlgmr.msra.gmra.mxu0 %v716_v11  ;;  %738 = vmatmul.bf16.vlgmr.msra.gmra.mxu1 %v716_v11 }
 0x249   :  { %751 = vmatmul.bf16.vlgmr.msra.gmra.mxu2 %v716_v11  ;;  %764 = vmatmul.bf16.vlgmr.msra.gmra.mxu3 %v716_v11 }
 0x24a   :  { %905 = vmatpush.bf16.msra.mxu0 %v2056_v24  ;;  %918 = vmatpush.bf16.msra.mxu1 %v2058_v25 }
 0x24b   :  { %931 = vmatpush.bf16.msra.mxu2 %v2066_v28  ;;  %944 = vmatpush.bf16.msra.mxu3 %v2068_v29 }
 0x24e   :  { %906 = vmatpush.bf16.msra.mxu0 %v2090_v36  ;;  %919 = vmatpush.bf16.msra.mxu1 %v2092_v37 }
 0x24f   :  { %932 = vmatpush.bf16.msra.mxu2 %v2102_v40  ;;  %945 = vmatpush.bf16.msra.mxu3 %v2104_v41 }
 0x252   :  { %907 = vmatpush.bf16.msra.mxu0 %v2126_v48  ;;  %920 = vmatpush.bf16.msra.mxu1 %v2128_v49 }
 0x253   :  { %933 = vmatpush.bf16.msra.mxu2 %v2141_v53  ;;  %946 = vmatpush.bf16.msra.mxu3 %v2143_v54 }
 0x256   :  { %908 = vmatpush.bf16.msra.mxu0 %v2165_v61  ;;  %921 = vmatpush.bf16.msra.mxu1 %v2167_v62 }
 0x257   :  { %934 = vmatpush.bf16.msra.mxu2 %v2177_v1  ;;  %947 = vmatpush.bf16.msra.mxu3 %v2179_v2 }
 0x25a   :  { %909 = vmatpush.bf16.msra.mxu0 %v2201_v9  ;;  %922 = vmatpush.bf16.msra.mxu1 %v2203_v10 }
 0x25b   :  { %935 = vmatpush.bf16.msra.mxu2 %v2213_v13  ;;  %948 = vmatpush.bf16.msra.mxu3 %v2215_v14 }
 0x25e   :  { %910 = vmatpush.bf16.msra.mxu0 %v2237_v21  ;;  %923 = vmatpush.bf16.msra.mxu1 %v2239_v22 }
 0x25f   :  { %936 = vmatpush.bf16.msra.mxu2 %v2249_v27  ;;  %949 = vmatpush.bf16.msra.mxu3 %v2251_v30 }
 0x262   :  { %911 = vmatpush.bf16.msra.mxu0 %v2273_v39  ;;  %924 = vmatpush.bf16.msra.mxu1 %v2275_v42 }
 0x263   :  { %937 = vmatpush.bf16.msra.mxu2 %v2285_v45  ;;  %950 = vmatpush.bf16.msra.mxu3 %v2287_v46 }
 0x266   :  { %912 = vmatpush.bf16.msra.mxu0 %v2309_v57  ;;  %925 = vmatpush.bf16.msra.mxu1 %v2311_v58 }
 0x267   :  { %938 = vmatpush.bf16.msra.mxu2 %v2315_v59  ;;  %951 = vmatpush.bf16.msra.mxu3 %v2317_v60 }
 0x2c5   :  { %v726_v12 = vpop.f32.mrf.mxu0  ;;  %v739_v20 = vpop.f32.mrf.mxu1 }
 0x2c6   :  { %v773_v23 = vrot.slane %v739_v20, 7 }
 0x2c8   :  { %v776_v38 = vsel %vm491_vm0, %v726_v12, %v773_v23 }
 0x2cc   :  { %v752_v26 = vpop.f32.mrf.mxu2  ;;  %v765_v31 = vpop.f32.mrf.mxu3 }
 0x2cd   :  { %v774_v32 = vrot.slane %v752_v26, 6  ;;  %v775_v33 = vrot.slane %v765_v31, 5  ;;  %v728_v34 = vpop.f32.mrf.mxu0  ;;  %v741_v35 = vpop.f32.mrf.mxu1 }
 0x2cf   :  { %v777_v43 = vsel %vm493_vm1, %v774_v32, %v775_v33 }
 0x2d0   :  { %v778_v47 = vsel %vm495_vm2, %v776_v38, %v777_v43 }
 0x2d1   :  { %v780_v50 = vadd.f32 %v778_v47, %v715_v44  ;;  %v809_v44 = vld [vmem:[#allocation2 + $0x4] ss:$8 sm:$0xf] }
 0x2d3   :  { %1670 = vtanh.f32 %v780_v50 }
 0x2d4   :  { %v754_v51 = vpop.f32.mrf.mxu2  ;;  %v767_v52 = vpop.f32.mrf.mxu3 }
 0x2d9   :  { %v1671_v55 = vpop.eup %1670 }
 0x2da   :  { %v782_v56 = vadd.f32 1.0, %v1671_v55  ;;  %v785_v63 = vrot.slane %v1671_v55, 1  ;;  %v794_v5 = vrot.slane %v1671_v55, 2  ;;  %v789_v8 = vrot.slane %v1671_v55, 3 }
 0x2dc   :  { %v783_v0 = vmul.f32 0.5, %v782_v56  ;;  %v787_v3 = vadd.f32 1.0, %v785_v63  ;;  %v791_v17 = vadd.f32 1.0, %v789_v8 }
 0x2de   :  { %v788_v4 = vmul.f32 0.5, %v787_v3  ;;  %v796_v7 = vmul.f32 %v794_v5, %v783_v0  ;;  %v792_v18 = vmul.f32 0.5, %v791_v17 }
 0x2e0   :  { %v793_v6 = vmul.f32 %v788_v4, %v2471_v15 }
 0x2e2   :  { %v2510_v16 = vadd.f32 %v796_v7, %v793_v6 }
 0x2e4   :  { %1672 = vtanh.f32 %v2510_v16 }
 0x2ea   :  { %v1673_v19 = vpop.eup %1672 }
 0x2eb   :  { %v799_v11 = vmul.f32 %v1673_v19, %v792_v18 }
 0x2ed   :  { %v810_v12 = vpack.c.bf16 %v799_v11, %v799_v11 }
 0x2ef   :  { %819 = vmatmul.bf16.vlgmr.msrb.gmra.mxu0 %v810_v12  ;;  %832 = vmatmul.bf16.vlgmr.msrb.gmra.mxu1 %v810_v12 }
 0x2f0   :  { %845 = vmatmul.bf16.vlgmr.msrb.gmra.mxu2 %v810_v12  ;;  %858 = vmatmul.bf16.vlgmr.msrb.gmra.mxu3 %v810_v12 }
 0x2f1   :  { %999 = vmatpush.bf16.msrb.mxu0 %v2056_v24  ;;  %1012 = vmatpush.bf16.msrb.mxu1 %v2058_v25 }
 0x2f2   :  { %1025 = vmatpush.bf16.msrb.mxu2 %v2066_v28  ;;  %1038 = vmatpush.bf16.msrb.mxu3 %v2068_v29 }
 0x2f5   :  { %1000 = vmatpush.bf16.msrb.mxu0 %v2090_v36  ;;  %1013 = vmatpush.bf16.msrb.mxu1 %v2092_v37 }
 0x2f6   :  { %1026 = vmatpush.bf16.msrb.mxu2 %v2102_v40  ;;  %1039 = vmatpush.bf16.msrb.mxu3 %v2104_v41 }
 0x2f9   :  { %1001 = vmatpush.bf16.msrb.mxu0 %v2126_v48  ;;  %1014 = vmatpush.bf16.msrb.mxu1 %v2128_v49 }
 0x2fa   :  { %1027 = vmatpush.bf16.msrb.mxu2 %v2141_v53  ;;  %1040 = vmatpush.bf16.msrb.mxu3 %v2143_v54 }
 0x2fd   :  { %1002 = vmatpush.bf16.msrb.mxu0 %v2165_v61  ;;  %1015 = vmatpush.bf16.msrb.mxu1 %v2167_v62 }
 0x2fe   :  { %1028 = vmatpush.bf16.msrb.mxu2 %v2177_v1  ;;  %1041 = vmatpush.bf16.msrb.mxu3 %v2179_v2 }
 0x301   :  { %1003 = vmatpush.bf16.msrb.mxu0 %v2201_v9  ;;  %1016 = vmatpush.bf16.msrb.mxu1 %v2203_v10 }
 0x302   :  { %1029 = vmatpush.bf16.msrb.mxu2 %v2213_v13  ;;  %1042 = vmatpush.bf16.msrb.mxu3 %v2215_v14 }
 0x305   :  { %1004 = vmatpush.bf16.msrb.mxu0 %v2237_v21  ;;  %1017 = vmatpush.bf16.msrb.mxu1 %v2239_v22 }
 0x306   :  { %1030 = vmatpush.bf16.msrb.mxu2 %v2249_v27  ;;  %1043 = vmatpush.bf16.msrb.mxu3 %v2251_v30 }
 0x309   :  { %1005 = vmatpush.bf16.msrb.mxu0 %v2273_v39  ;;  %1018 = vmatpush.bf16.msrb.mxu1 %v2275_v42 }
 0x30a   :  { %1031 = vmatpush.bf16.msrb.mxu2 %v2285_v45  ;;  %1044 = vmatpush.bf16.msrb.mxu3 %v2287_v46 }
 0x30d   :  { %1006 = vmatpush.bf16.msrb.mxu0 %v2309_v57  ;;  %1019 = vmatpush.bf16.msrb.mxu1 %v2311_v58 }
 0x30e   :  { %1032 = vmatpush.bf16.msrb.mxu2 %v2315_v59  ;;  %1045 = vmatpush.bf16.msrb.mxu3 %v2317_v60 }
 0x36c   :  { %v820_v15 = vpop.f32.mrf.mxu0  ;;  %v833_v20 = vpop.f32.mrf.mxu1 }
 0x36d   :  { %v867_v23 = vrot.slane %v833_v20, 7 }
 0x36f   :  { %v870_v38 = vsel %vm491_vm0, %v820_v15, %v867_v23 }
 0x373   :  { %v846_v26 = vpop.f32.mrf.mxu2  ;;  %v859_v31 = vpop.f32.mrf.mxu3 }
 0x374   :  { %v868_v32 = vrot.slane %v846_v26, 6  ;;  %v869_v33 = vrot.slane %v859_v31, 5  ;;  %v822_v34 = vpop.f32.mrf.mxu0  ;;  %v835_v35 = vpop.f32.mrf.mxu1 }
 0x376   :  { %v871_v43 = vsel %vm493_vm1, %v868_v32, %v869_v33 }
 0x377   :  { %v872_v47 = vsel %vm495_vm2, %v870_v38, %v871_v43 }
 0x378   :  { %v874_v50 = vadd.f32 %v872_v47, %v809_v44  ;;  %v997_v44 = vld [vmem:[#allocation2 + $0x6] ss:$8 sm:$0xf] }
 0x37a   :  { %1674 = vtanh.f32 %v874_v50 }
 0x37b   :  { %v848_v51 = vpop.f32.mrf.mxu2  ;;  %v861_v52 = vpop.f32.mrf.mxu3 }
 0x380   :  { %v1675_v55 = vpop.eup %1674 }
 0x381   :  { %v876_v56 = vadd.f32 1.0, %v1675_v55  ;;  %v879_v63 = vrot.slane %v1675_v55, 1  ;;  %v888_v5 = vrot.slane %v1675_v55, 2  ;;  %v883_v8 = vrot.slane %v1675_v55, 3 }
 0x383   :  { %v877_v0 = vmul.f32 0.5, %v876_v56  ;;  %v881_v3 = vadd.f32 1.0, %v879_v63  ;;  %v885_v18 = vadd.f32 1.0, %v883_v8 }
 0x385   :  { %v882_v4 = vmul.f32 0.5, %v881_v3  ;;  %v890_v7 = vmul.f32 %v888_v5, %v877_v0  ;;  %v886_v19 = vmul.f32 0.5, %v885_v18 }
 0x387   :  { %v887_v6 = vmul.f32 %v882_v4, %v2510_v16 }
 0x389   :  { %v2549_v17 = vadd.f32 %v890_v7, %v887_v6 }
 0x38b   :  { %1676 = vtanh.f32 %v2549_v17 }
 0x391   :  { %v1677_v11 = vpop.eup %1676 }
 0x392   :  { %v893_v12 = vmul.f32 %v1677_v11, %v886_v19 }
 0x394   :  { %v904_v15 = vpack.c.bf16 %v893_v12, %v893_v12 }
 0x396   :  { %913 = vmatmul.bf16.vlgmr.msra.gmra.mxu0 %v904_v15  ;;  %926 = vmatmul.bf16.vlgmr.msra.gmra.mxu1 %v904_v15 }
 0x397   :  { %939 = vmatmul.bf16.vlgmr.msra.gmra.mxu2 %v904_v15  ;;  %952 = vmatmul.bf16.vlgmr.msra.gmra.mxu3 %v904_v15 }
 0x398   :  { %1093 = vmatpush.bf16.msra.mxu0 %v2056_v24  ;;  %1106 = vmatpush.bf16.msra.mxu1 %v2058_v25 }
 0x399   :  { %1119 = vmatpush.bf16.msra.mxu2 %v2066_v28  ;;  %1132 = vmatpush.bf16.msra.mxu3 %v2068_v29 }
 0x39c   :  { %1094 = vmatpush.bf16.msra.mxu0 %v2090_v36  ;;  %1107 = vmatpush.bf16.msra.mxu1 %v2092_v37 }
 0x39d   :  { %1120 = vmatpush.bf16.msra.mxu2 %v2102_v40  ;;  %1133 = vmatpush.bf16.msra.mxu3 %v2104_v41 }
 0x3a0   :  { %1095 = vmatpush.bf16.msra.mxu0 %v2126_v48  ;;  %1108 = vmatpush.bf16.msra.mxu1 %v2128_v49 }
 0x3a1   :  { %1121 = vmatpush.bf16.msra.mxu2 %v2141_v53  ;;  %1134 = vmatpush.bf16.msra.mxu3 %v2143_v54  ;;  %v903_v54 = vld [vmem:[#allocation2 + $0x5] ss:$8 sm:$0xf] }
 0x3a4   :  { %1096 = vmatpush.bf16.msra.mxu0 %v2165_v61  ;;  %1109 = vmatpush.bf16.msra.mxu1 %v2167_v62 }
 0x3a5   :  { %1122 = vmatpush.bf16.msra.mxu2 %v2177_v1  ;;  %1135 = vmatpush.bf16.msra.mxu3 %v2179_v2 }
 0x3a8   :  { %1097 = vmatpush.bf16.msra.mxu0 %v2201_v9  ;;  %1110 = vmatpush.bf16.msra.mxu1 %v2203_v10 }
 0x3a9   :  { %1123 = vmatpush.bf16.msra.mxu2 %v2213_v13  ;;  %1136 = vmatpush.bf16.msra.mxu3 %v2215_v14 }
 0x3ac   :  { %1098 = vmatpush.bf16.msra.mxu0 %v2237_v21  ;;  %1111 = vmatpush.bf16.msra.mxu1 %v2239_v22 }
 0x3ad   :  { %1124 = vmatpush.bf16.msra.mxu2 %v2249_v27  ;;  %1137 = vmatpush.bf16.msra.mxu3 %v2251_v30 }
 0x3b0   :  { %1099 = vmatpush.bf16.msra.mxu0 %v2273_v39  ;;  %1112 = vmatpush.bf16.msra.mxu1 %v2275_v42 }
 0x3b1   :  { %1125 = vmatpush.bf16.msra.mxu2 %v2285_v45  ;;  %1138 = vmatpush.bf16.msra.mxu3 %v2287_v46 }
 0x3b4   :  { %1100 = vmatpush.bf16.msra.mxu0 %v2309_v57  ;;  %1113 = vmatpush.bf16.msra.mxu1 %v2311_v58 }
 0x3b5   :  { %1126 = vmatpush.bf16.msra.mxu2 %v2315_v59  ;;  %1139 = vmatpush.bf16.msra.mxu3 %v2317_v60 }
 0x413   :  { %v914_v24 = vpop.f32.mrf.mxu0  ;;  %v927_v25 = vpop.f32.mrf.mxu1 }
 0x414   :  { %v961_v28 = vrot.slane %v927_v25, 7  ;;  %v1190_v25 = vld [vmem:[%s2665_s4 + $0x70] sm:$0xff] }
 0x416   :  { %v964_v49 = vsel %vm491_vm0, %v914_v24, %v961_v28  ;;  %v1191_v24 = vld [vmem:[%s2665_s4 + $0x78] sm:$0xff]  ;;  %v1189_v28 = vld [vmem:[%s2665_s4 + $0x68] sm:$0xff] }
 0x41a   :  { %v940_v29 = vpop.f32.mrf.mxu2  ;;  %v953_v36 = vpop.f32.mrf.mxu3 }
 0x41b   :  { %v962_v37 = vrot.slane %v940_v29, 6  ;;  %v963_v40 = vrot.slane %v953_v36, 5  ;;  %v916_v41 = vpop.f32.mrf.mxu0  ;;  %v929_v48 = vpop.f32.mrf.mxu1  ;;  %v1188_v29 = vld [vmem:[%s2665_s4 + $0x60] sm:$0xff]  ;;  %v1187_v36 = vld [vmem:[%s2665_s4 + $0x58] sm:$0xff] }
 0x41c   :  { %v1184_v41 = vld [vmem:[%s2665_s4 + $0x40] sm:$0xff]  ;;  %v1183_v48 = vld [vmem:[%s2665_s4 + $0x38] sm:$0xff] }
 0x41d   :  { %v965_v53 = vsel %vm493_vm1, %v962_v37, %v963_v40  ;;  %v1186_v37 = vld [vmem:[%s2665_s4 + $0x50] sm:$0xff]  ;;  %v1185_v40 = vld [vmem:[%s2665_s4 + $0x48] sm:$0xff] }
 0x41e   :  { %v966_v61 = vsel %vm495_vm2, %v964_v49, %v965_v53  ;;  %v1182_v49 = vld [vmem:[%s2665_s4 + $0x30] sm:$0xff]  ;;  %v1181_v53 = vld [vmem:[%s2665_s4 + $0x28] sm:$0xff] }
 0x41f   :  { %v968_v62 = vadd.f32 %v966_v61, %v903_v54  ;;  %v1180_v54 = vld [vmem:[%s2665_s4 + $0x20] sm:$0xff]  ;;  %v1179_v61 = vld [vmem:[%s2665_s4 + $0x18] sm:$0xff] }
 0x421   :  { %1678 = vtanh.f32 %v968_v62 }
 0x422   :  { %v942_v1 = vpop.f32.mrf.mxu2  ;;  %v955_v2 = vpop.f32.mrf.mxu3 }
 0x423   :  { %v1178_v2 = vld [vmem:[%s2665_s4 + $0x10] sm:$0xff] }
 0x427   :  { %v1679_v9 = vpop.eup %1678 }
 0x428   :  { %v970_v10 = vadd.f32 1.0, %v1679_v9  ;;  %v973_v13 = vrot.slane %v1679_v9, 1  ;;  %v982_v27 = vrot.slane %v1679_v9, 2  ;;  %v977_v42 = vrot.slane %v1679_v9, 3  ;;  %v1177_v9 = vld [vmem:[%s2665_s4 + $0x8] sm:$0xff] }
 0x42a   :  { %v971_v14 = vmul.f32 0.5, %v970_v10  ;;  %v975_v21 = vadd.f32 1.0, %v973_v13  ;;  %v979_v46 = vadd.f32 1.0, %v977_v42  ;;  %v1176_v10 = vld [vmem:[%s2665_s4] sm:$0xff] }
 0x42c   :  { %v976_v22 = vmul.f32 0.5, %v975_v21  ;;  %v984_v39 = vmul.f32 %v982_v27, %v971_v14  ;;  %v980_v57 = vmul.f32 0.5, %v979_v46  ;;  %v1091_v46 = vld [vmem:[#allocation2 + $0x7] ss:$8 sm:$0xf] }
 0x42e   :  { %v981_v30 = vmul.f32 %v976_v22, %v2549_v17 }
 0x430   :  { %v985_v45 = vadd.f32 %v984_v39, %v981_v30 }
 0x432   :  { %1680 = vtanh.f32 %v985_v45 }
 0x438   :  { %v1681_v58 = vpop.eup %1680 }
 0x439   :  { %v987_v59 = vmul.f32 %v1681_v58, %v980_v57 }
 0x43b   :  { %v998_v60 = vpack.c.bf16 %v987_v59, %v987_v59 }
 0x43d   :  { %1007 = vmatmul.bf16.vlgmr.msrb.gmra.mxu0 %v998_v60  ;;  %1020 = vmatmul.bf16.vlgmr.msrb.gmra.mxu1 %v998_v60 }
 0x43e   :  { %1033 = vmatmul.bf16.vlgmr.msrb.gmra.mxu2 %v998_v60  ;;  %1046 = vmatmul.bf16.vlgmr.msrb.gmra.mxu3 %v998_v60 }
 0x43f   :  { %1193 = vmatpush.msrb.mxu0 %v1191_v24 }
 0x441   :  { %1194 = vmatpush.msrb.mxu0 %v1190_v25 }
 0x443   :  { %1195 = vmatpush.msrb.mxu0 %v1189_v28 }
 0x445   :  { %1196 = vmatpush.msrb.mxu0 %v1188_v29 }
 0x447   :  { %1197 = vmatpush.msrb.mxu0 %v1187_v36 }
 0x449   :  { %1198 = vmatpush.msrb.mxu0 %v1186_v37 }
 0x44b   :  { %1199 = vmatpush.msrb.mxu0 %v1185_v40 }
 0x44d   :  { %1200 = vmatpush.msrb.mxu0 %v1184_v41 }
 0x44f   :  { %1201 = vmatpush.msrb.mxu0 %v1183_v48 }
 0x451   :  { %1202 = vmatpush.msrb.mxu0 %v1182_v49 }
 0x453   :  { %1203 = vmatpush.msrb.mxu0 %v1181_v53 }
 0x455   :  { %1204 = vmatpush.msrb.mxu0 %v1180_v54 }
 0x457   :  { %1205 = vmatpush.msrb.mxu0 %v1179_v61 }
 0x459   :  { %1206 = vmatpush.msrb.mxu0 %v1178_v2 }
 0x45b   :  { %1207 = vmatpush.msrb.mxu0 %v1177_v9 }
 0x45d   :  { %1208 = vmatpush.msrb.mxu0 %v1176_v10 }
 0x4ba   :  { %v1008_v16 = vpop.f32.mrf.mxu0  ;;  %v1021_v20 = vpop.f32.mrf.mxu1 }
 0x4bb   :  { %v1055_v23 = vrot.slane %v1021_v20, 7 }
 0x4bd   :  { %v1058_v38 = vsel %vm491_vm0, %v1008_v16, %v1055_v23 }
 0x4c1   :  { %v1034_v26 = vpop.f32.mrf.mxu2  ;;  %v1047_v31 = vpop.f32.mrf.mxu3 }
 0x4c2   :  { %v1056_v32 = vrot.slane %v1034_v26, 6  ;;  %v1057_v33 = vrot.slane %v1047_v31, 5  ;;  %v1010_v34 = vpop.f32.mrf.mxu0  ;;  %v1023_v35 = vpop.f32.mrf.mxu1 }
 0x4c4   :  { %v1059_v43 = vsel %vm493_vm1, %v1056_v32, %v1057_v33 }
 0x4c5   :  { %v1060_v47 = vsel %vm495_vm2, %v1058_v38, %v1059_v43 }
 0x4c6   :  { %v1062_v50 = vadd.f32 %v1060_v47, %v997_v44 }
 0x4c8   :  { %1682 = vtanh.f32 %v1062_v50 }
 0x4c9   :  { %v1036_v51 = vpop.f32.mrf.mxu2  ;;  %v1049_v52 = vpop.f32.mrf.mxu3 }
 0x4ca   :  { %v1192_v52 = vld [vmem:[%s2666_s5] sm:$0x1] }
 0x4ce   :  { %v1683_v55 = vpop.eup %1682 }
 0x4cf   :  { %v1064_v56 = vadd.f32 1.0, %v1683_v55  ;;  %v1067_v63 = vrot.slane %v1683_v55, 1  ;;  %v1076_v5 = vrot.slane %v1683_v55, 2  ;;  %v1071_v8 = vrot.slane %v1683_v55, 3 }
 0x4d1   :  { %v1065_v0 = vmul.f32 0.5, %v1064_v56  ;;  %v1069_v3 = vadd.f32 1.0, %v1067_v63  ;;  %v1073_v18 = vadd.f32 1.0, %v1071_v8 }
 0x4d3   :  { %v1070_v4 = vmul.f32 0.5, %v1069_v3  ;;  %v1078_v7 = vmul.f32 %v1076_v5, %v1065_v0  ;;  %v1074_v19 = vmul.f32 0.5, %v1073_v18 }
 0x4d5   :  { %v1075_v6 = vmul.f32 %v1070_v4, %v985_v45 }
 0x4d7   :  { %v2591_v17 = vadd.f32 %v1078_v7, %v1075_v6 }
 0x4d9   :  { %1684 = vtanh.f32 %v2591_v17 }
 0x4df   :  { %v1685_v11 = vpop.eup %1684 }
 0x4e0   :  { %v1081_v12 = vmul.f32 %v1685_v11, %v1074_v19 }
 0x4e2   :  { %v1092_v15 = vpack.c.bf16 %v1081_v12, %v1081_v12 }
 0x4e4   :  { %1101 = vmatmul.bf16.vlgmr.msra.gmra.mxu0 %v1092_v15  ;;  %1114 = vmatmul.bf16.vlgmr.msra.gmra.mxu1 %v1092_v15 }
 0x4e5   :  { %1127 = vmatmul.bf16.vlgmr.msra.gmra.mxu2 %v1092_v15  ;;  %1140 = vmatmul.bf16.vlgmr.msra.gmra.mxu3 %v1092_v15 }
 0x561   :  { %v1102_v62 = vpop.f32.mrf.mxu0  ;;  %v1115_v1 = vpop.f32.mrf.mxu1 }
 0x562   :  { %v1149_v13 = vrot.slane %v1115_v1, 7 }
 0x564   :  { %v1152_v42 = vsel %vm491_vm0, %v1102_v62, %v1149_v13 }
 0x568   :  { %v1128_v14 = vpop.f32.mrf.mxu2  ;;  %v1141_v21 = vpop.f32.mrf.mxu3 }
 0x569   :  { %v1150_v22 = vrot.slane %v1128_v14, 6  ;;  %v1151_v27 = vrot.slane %v1141_v21, 5  ;;  %v1104_v30 = vpop.f32.mrf.mxu0  ;;  %v1117_v39 = vpop.f32.mrf.mxu1 }
 0x56b   :  { %v1153_v45 = vsel %vm493_vm1, %v1150_v22, %v1151_v27 }
 0x56c   :  { %v1154_v57 = vsel %vm495_vm2, %v1152_v42, %v1153_v45 }
 0x56d   :  { %v1156_v58 = vadd.f32 %v1154_v57, %v1091_v46 }
 0x56f   :  { %1686 = vtanh.f32 %v1156_v58 }
 0x570   :  { %v1130_v59 = vpop.f32.mrf.mxu2  ;;  %v1143_v60 = vpop.f32.mrf.mxu3 }
 0x575   :  { %v1687_v16 = vpop.eup %1686 }
 0x576   :  { %v1158_v20 = vadd.f32 1.0, %v1687_v16  ;;  %v1161_v23 = vrot.slane %v1687_v16, 1  ;;  %v1170_v33 = vrot.slane %v1687_v16, 2  ;;  %v1165_v38 = vrot.slane %v1687_v16, 3 }
 0x578   :  { %v1159_v26 = vmul.f32 0.5, %v1158_v20  ;;  %v1163_v31 = vadd.f32 1.0, %v1161_v23  ;;  %v1167_v44 = vadd.f32 1.0, %v1165_v38 }
 0x57a   :  { %v1164_v32 = vmul.f32 0.5, %v1163_v31  ;;  %v1172_v35 = vmul.f32 %v1170_v33, %v1159_v26  ;;  %v1168_v47 = vmul.f32 0.5, %v1167_v44 }
 0x57c   :  { %v1169_v34 = vmul.f32 %v1164_v32, %v2591_v17 }
 0x57e   :  { %v1173_v43 = vadd.f32 %v1172_v35, %v1169_v34 }
 0x580   :  { %1688 = vtanh.f32 %v1173_v43 }
 0x586   :  { %v1689_v50 = vpop.eup %1688 }
 0x587   :  { %v1175_v51 = vmul.f32 %v1689_v50, %v1168_v47 }
 0x589   :  { %1209 = vmatmul.f32.vlgmr.msrb.gmra.mxu0 %v1175_v51 }
 0x606   :  { %v1210_v55 = vpop.f32.mrf.mxu0 }
 0x607   :  { %v2649_v56 = vadd.f32 %v1210_v55, %v1192_v52 }
 0x609   :  { %1213 = vst [vmem:[#allocation5] sm:$0x1] %v2649_v56 }
 0x60a   :  { %1738 = dma.done.wait [#allocation4], 2048 }
 0x60b   :  { %1739 = vsyncadd [#allocation4], 4294965248  ;;  %v1600_v63 = vld [vmem:[#allocation3 + $0x70] sm:$0xf]  ;;  %v1654_v0 = vld [vmem:[#allocation3 + $0x74] sm:$0xf0]  ;;  %v1218_v23 = vpack.c.bf16 %v2649_v56, %v2649_v56  ;;  %v1346_v31 = vlaneseq }
 0x60c   :  { %v1653_v3 = vld [vmem:[#allocation3 + $0x74] sm:$0xf]  ;;  %v1601_v4 = vor.u32 %v1654_v0, %v1600_v63  ;;  %v1602_v5 = vld [vmem:[#allocation3 + $0x78] sm:$0xf0]  ;;  %v1592_v6 = vld [vmem:[#allocation3 + $0x60] sm:$0xf] }
 0x60d   :  { %v1652_v7 = vld [vmem:[#allocation3 + $0x64] sm:$0xf0]  ;;  %v1605_v8 = vor.u32 %v1653_v3, %v1602_v5  ;;  %v1651_v17 = vld [vmem:[#allocation3 + $0x64] sm:$0xf]  ;;  %v1594_v18 = vld [vmem:[#allocation3 + $0x68] sm:$0xf0] }
 0x60e   :  { %1315 = vmatpush.bf16.msrb.mxu1 %v1601_v4  ;;  %v1593_v19 = vor.u32 %v1652_v7, %v1592_v6  ;;  %v1597_v11 = vor.u32 %v1651_v17, %v1594_v18  ;;  %v1584_v12 = vld [vmem:[#allocation3 + $0x50] sm:$0xf]  ;;  %v1650_v15 = vld [vmem:[#allocation3 + $0x54] sm:$0xf0]  ;;  %v1649_v24 = vld [vmem:[#allocation3 + $0x54] sm:$0xf] }
 0x60f   :  { %1328 = vmatpush.bf16.msrb.mxu2 %v1605_v8  ;;  %v1586_v25 = vld [vmem:[#allocation3 + $0x58] sm:$0xf0]  ;;  %v1585_v28 = vor.u32 %v1650_v15, %v1584_v12  ;;  %v1576_v36 = vld [vmem:[#allocation3 + $0x40] sm:$0xf]  ;;  %v1648_v37 = vld [vmem:[#allocation3 + $0x44] sm:$0xf0] }
 0x610   :  { %v1589_v29 = vor.u32 %v1649_v24, %v1586_v25  ;;  %v1647_v40 = vld [vmem:[#allocation3 + $0x44] sm:$0xf]  ;;  %v1578_v41 = vld [vmem:[#allocation3 + $0x48] sm:$0xf0]  ;;  %v1577_v48 = vor.u32 %v1648_v37, %v1576_v36  ;;  %v1568_v53 = vld [vmem:[#allocation3 + $0x30] sm:$0xf] }
 0x611   :  { %v1581_v49 = vor.u32 %v1647_v40, %v1578_v41  ;;  %v1646_v54 = vld [vmem:[#allocation3 + $0x34] sm:$0xf0]  ;;  %v1645_v61 = vld [vmem:[#allocation3 + $0x34] sm:$0xf]  ;;  %v1570_v62 = vld [vmem:[#allocation3 + $0x38] sm:$0xf0] }
 0x612   :  { %1316 = vmatpush.bf16.msrb.mxu1 %v1593_v19  ;;  %v1569_v1 = vor.u32 %v1646_v54, %v1568_v53  ;;  %v1573_v2 = vor.u32 %v1645_v61, %v1570_v62  ;;  %v1560_v9 = vld [vmem:[#allocation3 + $0x20] sm:$0xf]  ;;  %v1644_v10 = vld [vmem:[#allocation3 + $0x24] sm:$0xf0]  ;;  %v1643_v13 = vld [vmem:[#allocation3 + $0x24] sm:$0xf] }
 0x613   :  { %1329 = vmatpush.bf16.msrb.mxu2 %v1597_v11  ;;  %v1562_v14 = vld [vmem:[#allocation3 + $0x28] sm:$0xf0]  ;;  %v1561_v21 = vor.u32 %v1644_v10, %v1560_v9  ;;  %v1552_v27 = vld [vmem:[#allocation3 + $0x10] sm:$0xf]  ;;  %v1642_v30 = vld [vmem:[#allocation3 + $0x14] sm:$0xf0] }
 0x614   :  { %v1565_v22 = vor.u32 %v1643_v13, %v1562_v14  ;;  %v1641_v39 = vld [vmem:[#allocation3 + $0x14] sm:$0xf]  ;;  %v1554_v42 = vld [vmem:[#allocation3 + $0x18] sm:$0xf0]  ;;  %v1553_v45 = vor.u32 %v1642_v30, %v1552_v27  ;;  %v1544_v57 = vld [vmem:[#allocation3] sm:$0xf] }
 0x615   :  { %v1557_v46 = vor.u32 %v1641_v39, %v1554_v42  ;;  %v1640_v58 = vld [vmem:[#allocation3 + $0x4] sm:$0xf0]  ;;  %v1639_v59 = vld [vmem:[#allocation3 + $0x4] sm:$0xf]  ;;  %v1546_v60 = vld [vmem:[#allocation3 + $0x8] sm:$0xf0] }
 0x616   :  { %1317 = vmatpush.bf16.msrb.mxu1 %v1585_v28  ;;  %v1545_v16 = vor.u32 %v1640_v58, %v1544_v57  ;;  %v1549_v20 = vor.u32 %v1639_v59, %v1546_v60  ;;  %s1745_s5 = smov [#allocation5]   ;;  %s1358_s20 = sshll.u32 %s2668_s7, 4  ;;  %vm1348_vm3 = vcmp.lt.s32.totalorder %v1346_v31, 256  ;;  %s1359_s20 = int_to_ptr.hbm [resolvable:$true] %s1358_s20 }
 0x617   :  { %1330 = vmatpush.bf16.msrb.mxu2 %v1589_v29  ;;  %s1356_s17 = sshll.u32 %s1745_s5, 4  ;;  %s1746_s21 = smov [#allocation7]   ;;  %s1357_s17 = int_to_ptr.vmem [resolvable:$true] %s1356_s17 }
 0x618   :  { %1361 = dma.vmem_to_hbm [thread:$0]  %s1357_s17, 16, %s1359_s20, [#allocation6]  }
 0x619   :  { %s1367_s6 = sshll.u32 %s1746_s21, 4  ;;  %s1369_s24 = sshll.u32 %s2669_s8, 4  ;;  %s1368_s6 = int_to_ptr.vmem [resolvable:$true] %s1367_s6  ;;  %s1370_s24 = int_to_ptr.hbm [resolvable:$true] %s1369_s24 }
 0x61a   :  { %1318 = vmatpush.bf16.msrb.mxu1 %v1577_v48 }
 0x61b   :  { %1331 = vmatpush.bf16.msrb.mxu2 %v1581_v49 }
 0x61e   :  { %1319 = vmatpush.bf16.msrb.mxu1 %v1569_v1 }
 0x61f   :  { %1332 = vmatpush.bf16.msrb.mxu2 %v1573_v2 }
 0x622   :  { %1320 = vmatpush.bf16.msrb.mxu1 %v1561_v21 }
 0x623   :  { %1333 = vmatpush.bf16.msrb.mxu2 %v1565_v22 }
 0x626   :  { %1321 = vmatpush.bf16.msrb.mxu1 %v1553_v45 }
 0x627   :  { %1334 = vmatpush.bf16.msrb.mxu2 %v1557_v46 }
 0x62a   :  { %1322 = vmatpush.bf16.msrb.mxu1 %v1545_v16 }
 0x62b   :  { %1335 = vmatpush.bf16.msrb.mxu2 %v1549_v20 }
 0x62d   :  { %1323 = vmatmul.bf16.vlgmr.msrb.gmra.mxu1 %v1218_v23 }
 0x62e   :  { %1336 = vmatmul.bf16.vlgmr.msrb.gmra.mxu2 %v1218_v23 }
 0x6aa   :  { %v1324_v26 = vpop.f32.mrf.mxu1 }
 0x6b1   :  { %v1337_v32 = vpop.f32.mrf.mxu2 }
 0x6b2   :  { %v1343_v33 = vrot.slane %v1337_v32, 7  ;;  %v1326_v34 = vpop.f32.mrf.mxu1 }
 0x6b4   :  { %v1344_v35 = vsel %vm491_vm0, %v1324_v26, %v1343_v33 }
 0x6b5   :  { %1350 = vst.msk [vmem:[#allocation7] sm:$0x3] %vm1348_vm3, %v1344_v35 }
 0x6b6   :  { %1372 = dma.vmem_to_hbm [thread:$0]  %s1368_s6, 32, %s1370_s24, [#allocation8]  }
 0x6b9   :  { %v1339_v38 = vpop.f32.mrf.mxu2 }
 0x6ba   :  { %1740 = dma.done.wait [#allocation6], 16  }
 0x6bb   :  { %1741 = vsyncadd [#allocation6], 4294967280 }
 0x6bc   :  { %1742 = dma.done.wait [#allocation8], 32  }
 0x6bd   :  { %1743 = vsyncadd [#allocation8], 4294967264 }
 0x6be   :  { %1381 = vsyncpa [#allocation6], 1 }
 0x6bf   :  { %1382 = vsyncpa [#allocation8], 1 }
 0x6c0   :  { %1383 = vsyncmov [#allocation4] }
 0x6c3   :  { %s1384_s7 = vpop.sfrf %1383 }
 0x6c4   :  { %p1606_p0 = scmp.ne.s32.totalorder %s1384_s7, 0 }
 0x6c6   :  { %1388 = shalt.err (%p1606_p0)  }

</bundles_post_ra>
